<compile_context>
chip_gen: v5e
topology: v5e:2x2
jax: 0.10.0
libtpu: 0.0.40
codegen_flags: <defaults>
</compile_context>

<pallas_src>
import math

import jax
import jax.numpy as jnp
from jax import lax
from jax.experimental import pallas as pl
from jax.experimental.pallas import tpu as pltpu

# ----------------------------- configuration --------------------------------
D = 32          # dim_hidden
H = 4           # num_heads
DH = D // H     # per-head dim
K_SEEDS = 4     # num_outputs (PMA seed vectors)
KP = 8          # seed rows padded to 8 per head -> sublane-aligned row blocks
HKP = H * KP
N_ITEMS = 8     # set size (sequence length)
B = 8           # number of sets processed per call
TB = 4          # sets per grid step (batch tile)
M_HID = 64      # mlp_hidden_size
LANES = 64      # lane width of the packed weight slab (= 2*D = M_HID)
LN_EPS = 1e-5   # torch.nn.LayerNorm default eps

# packed-weight-slab row offsets (all in-kernel slices are static & 0-based in lanes)
ROWS_Q    = 0                 # (HKP, 64)  [ 0 | masked, scaled q ]   (q in lanes D:2D)
ROWS_WKV  = ROWS_Q + HKP      # (D,   64)  [ Wv | Wk ]
ROWS_WO   = ROWS_WKV + D      # (D,   64)  Wo in lanes 0:D
ROWS_MASK = ROWS_WO + D       # (HKP, 64)  block-diagonal head mask in lanes 0:D
ROWS_W1   = ROWS_MASK + HKP   # (D,   64)  W1
ROWS_W2   = ROWS_W1 + D       # (M,   64)  W2
ROWS_W3   = ROWS_W2 + M_HID   # (M,   64)  W3 in lanes 0:D
ROWS_VEC  = ROWS_W3 + M_HID   # (16,  64)  LN params / biases (row-indexed)
R_TOTAL   = ROWS_VEC + 16     # 304 rows total  -> (304, 64) f32 slab = 76 KiB


def _layer_norm(x, gamma, beta):
    mu = jnp.mean(x, axis=-1, keepdims=True)
    var = jnp.mean((x - mu) ** 2, axis=-1, keepdims=True)
    return (x - mu) * lax.rsqrt(var + LN_EPS) * gamma + beta


# ------------------------------- kernel --------------------------------------
def pma_complete_kernel(x_ref, w_ref, out_ref):
    f32 = jnp.float32

    # --- weight views (static ref slices: zero-cost views) ---
    qpad  = w_ref[ROWS_Q:ROWS_Q + HKP, :]            # (32, 64) [0 | q*mask*scale]
    w_kv  = w_ref[ROWS_WKV:ROWS_WKV + D, :]          # (32, 64) [Wv | Wk]
    wo    = w_ref[ROWS_WO:ROWS_WO + D, 0:D]          # (32, 32)
    hmask = w_ref[ROWS_MASK:ROWS_MASK + HKP, 0:D]    # (32, 32)
    w1    = w_ref[ROWS_W1:ROWS_W1 + D, :]            # (32, 64)
    w2    = w_ref[ROWS_W2:ROWS_W2 + M_HID, :]        # (64, 64)
    w3    = w_ref[ROWS_W3:ROWS_W3 + M_HID, 0:D]      # (64, 32)

    # one load for all 1-D params, sliced in-register
    vec  = w_ref[ROWS_VEC:ROWS_VEC + 16, :]          # (16, 64)
    g1   = vec[0:1, 0:D]
    b1   = vec[1:2, 0:D]
    g2   = vec[2:3, 0:D]
    b2   = vec[3:4, 0:D]
    b_kv = vec[4:5, :]                               # (1, 64) = [bv | bk]
    bo   = vec[5:6, 0:D]
    c3   = vec[6:7, 0:D]
    c1   = vec[7:8, :]
    c2   = vec[8:9, :]

    # --- pre-norm over the whole batch tile at once ---
    x = x_ref[...].reshape(TB * N_ITEMS, D)                          # (32, 32)
    xn = _layer_norm(x, g1, b1)

    # --- fused K/V projection: single matmul for the whole tile ---
    kv = jnp.dot(xn, w_kv, preferred_element_type=f32) + b_kv        # (32, 64) = [v | k]

    # --- attention per set (static unroll; all slices sublane-aligned) ---
    att_rows = []
    for b in range(TB):
        r0 = b * N_ITEMS
        kv_b = kv[r0:r0 + N_ITEMS, :]                                # (8, 64)
        # scores: contract the full 64 lanes; qpad's v-half is zero, so only k counts
        s_b = lax.dot_general(qpad, kv_b, (((1,), (1,)), ((), ())),
                              preferred_element_type=f32)            # (32, 8)
        s_b = s_b - jnp.max(s_b, axis=-1, keepdims=True)
        e_b = jnp.exp(s_b)
        p_b = e_b * pl.reciprocal(jnp.sum(e_b, axis=-1, keepdims=True), approx=True)
        v_b = kv_b[:, 0:D]                                           # (8, 32) 0-based lanes
        # all heads' full-D weighted sums in one matmul, then mask + 3 VPU adds
        z_b = jnp.dot(p_b, v_b, preferred_element_type=f32)          # (32, 32)
        zm = z_b * hmask
        att_rows.append(zm[0:KP, :] + zm[KP:2 * KP, :]
                        + zm[2 * KP:3 * KP, :] + zm[3 * KP:4 * KP, :])   # (8, 32)
    o = jnp.concatenate(att_rows, axis=0)                            # (TB*KP, 32)

    # --- fc_o once for the whole tile ---
    out_attn = jnp.dot(o, wo, preferred_element_type=f32) + bo       # (32, 32)

    # --- pre-norm MLP (use_mlp=True, mlp_type='standard', 3 layers) + residual ---
    # TODO(synk): SmallMLP's exact activation is not specified; tanh-approx GELU
    # assumed (the pure-JAX reference makes the same assumption).
    y = _layer_norm(out_attn, g2, b2)
    h1 = jax.nn.gelu(jnp.dot(y, w1, preferred_element_type=f32) + c1, approximate=True)
    h2 = jax.nn.gelu(jnp.dot(h1, w2, preferred_element_type=f32) + c2, approximate=True)
    h3 = jnp.dot(h2, w3, preferred_element_type=f32) + c3
    out_ref[...] = (out_attn + h3).astype(out_ref.dtype)


# --------------------------- host-side parameter packing ----------------------
def pack_params(p):
    """Fold & pack all PMAComplete params into one lane-friendly slab (load-time, once)."""
    scale = 1.0 / math.sqrt(DH)
    q = p["S"] @ p["Wq"] + p["bq"]                                  # (K, D)

    w = jnp.zeros((R_TOTAL, LANES), jnp.float32)
    # masked, scaled, head-padded queries in lanes D:2D (k lives in kv lanes D:2D)
    for h in range(H):
        col_mask = jnp.zeros((D,), jnp.float32).at[h * DH:(h + 1) * DH].set(1.0)
        w = w.at[ROWS_Q + h * KP:ROWS_Q + h * KP + K_SEEDS, D:2 * D].set(
            q * col_mask[None, :] * scale)
    # fused value/key projection [Wv | Wk]
    w = w.at[ROWS_WKV:ROWS_WKV + D, 0:D].set(p["Wv"])
    w = w.at[ROWS_WKV:ROWS_WKV + D, D:2 * D].set(p["Wk"])
    w = w.at[ROWS_WO:ROWS_WO + D, 0:D].set(p["Wo"])
    # block-diagonal head mask: row-block h keeps only head-h columns
    rh = jnp.arange(HKP)[:, None] // KP
    ch = jnp.arange(D)[None, :] // DH
    w = w.at[ROWS_MASK:ROWS_MASK + HKP, 0:D].set((rh == ch).astype(jnp.float32))
    # MLP weights
    w = w.at[ROWS_W1:ROWS_W1 + D, :].set(p["W1"])
    w = w.at[ROWS_W2:ROWS_W2 + M_HID, :].set(p["W2"])
    w = w.at[ROWS_W3:ROWS_W3 + M_HID, 0:D].set(p["W3"])
    # 1-D params, one row each
    rv = ROWS_VEC
    w = w.at[rv + 0:rv + 1, 0:D].set(p["g1"])
    w = w.at[rv + 1:rv + 2, 0:D].set(p["b1"])
    w = w.at[rv + 2:rv + 3, 0:D].set(p["g2"])
    w = w.at[rv + 3:rv + 4, 0:D].set(p["b2"])
    w = w.at[rv + 4:rv + 5, 0:D].set(p["bv"])
    w = w.at[rv + 4:rv + 5, D:2 * D].set(p["bk"])
    w = w.at[rv + 5:rv + 6, 0:D].set(p["bo"])
    w = w.at[rv + 6:rv + 7, 0:D].set(p["c3"])
    w = w.at[rv + 7:rv + 8, :].set(p["c1"])
    w = w.at[rv + 8:rv + 9, :].set(p["c2"])
    return w


# ------------------------------- wrapper --------------------------------------
@jax.jit
def pma_complete_forward(X, w_slab):
    b_total = X.shape[0]
    assert b_total % TB == 0
    out_flat = pl.pallas_call(
        pma_complete_kernel,
        out_shape=jax.ShapeDtypeStruct((b_total * KP, D), jnp.float32),
        grid=(b_total // TB,),                                   # batched grid over set tiles
        in_specs=[
            pl.BlockSpec((TB, N_ITEMS, D), lambda i: (i, 0, 0)),
            pl.BlockSpec((R_TOTAL, LANES), lambda i: (0, 0)),    # weights VMEM-resident
        ],
        out_specs=pl.BlockSpec((TB * KP, D), lambda i: (i, 0)),
        compiler_params=pltpu.CompilerParams(dimension_semantics=("parallel",)),
    )(X, w_slab)
    # keep only the K valid (non-padding) seed rows per set
    return out_flat.reshape(b_total, KP, D)[:, :K_SEEDS, :]


# --------------------------- parameter construction ---------------------------
def make_params(key):
    ks = list(jax.random.split(key, 12))

    def linear(k, din, dout):
        kw, kb = jax.random.split(k)
        lim = 1.0 / math.sqrt(din)                      # torch nn.Linear default init
        w = jax.random.uniform(kw, (din, dout), jnp.float32, -lim, lim)
        b = jax.random.uniform(kb, (1, dout), jnp.float32, -lim, lim)
        return w, b

    params = {
        "g1": jnp.ones((1, D), jnp.float32), "b1": jnp.zeros((1, D), jnp.float32),
        "g2": jnp.ones((1, D), jnp.float32), "b2": jnp.zeros((1, D), jnp.float32),
    }
    lim_s = math.sqrt(6.0 / (K_SEEDS + D))              # xavier_uniform_ for PMA seeds
    params["S"] = jax.random.uniform(ks[0], (K_SEEDS, D), jnp.float32, -lim_s, lim_s)
    params["Wq"], params["bq"] = linear(ks[1], D, D)
    params["Wk"], params["bk"] = linear(ks[2], D, D)
    params["Wv"], params["bv"] = linear(ks[3], D, D)
    params["Wo"], params["bo"] = linear(ks[4], D, D)
    params["W1"], params["c1"] = linear(ks[5], D, M_HID)
    params["W2"], params["c2"] = linear(ks[6], M_HID, M_HID)
    params["W3"], params["c3"] = linear(ks[7], M_HID, D)
    return params


# ------------------------------ pure-JAX reference ----------------------------
def reference_forward(X, p):
    b_total, n, _ = X.shape
    xn = _layer_norm(X, p["g1"], p["b1"])                       # (B, N, D) pre-norm
    q = p["S"] @ p["Wq"] + p["bq"]                              # (K, D)
    k = xn @ p["Wk"] + p["bk"]                                  # (B, N, D)
    v = xn @ p["Wv"] + p["bv"]
    qh = q.reshape(K_SEEDS, H, DH)
    kh = k.reshape(b_total, n, H, DH)
    vh = v.reshape(b_total, n, H, DH)
    scores = jnp.einsum("khd,bnhd->bhkn", qh, kh) / math.sqrt(DH)
    attn = jax.nn.softmax(scores, axis=-1)
    o = jnp.einsum("bhkn,bnhd->bkhd", attn, vh).reshape(b_total, K_SEEDS, D)
    out_attn = o @ p["Wo"] + p["bo"]
    out = out_attn                       # num_outputs != set size -> no X residual
    y = _layer_norm(out, p["g2"], p["b2"])
    h1 = jax.nn.gelu(y @ p["W1"] + p["c1"], approximate=True)
    h2 = jax.nn.gelu(h1 @ p["W2"] + p["c2"], approximate=True)
    h3 = h2 @ p["W3"] + p["c3"]
    return out + h3


# ---------------------------------- main --------------------------------------
if __name__ == "__main__":
    key = jax.random.PRNGKey(0)
    kx, kp = jax.random.split(key)
    X = jax.random.normal(kx, (B, N_ITEMS, D), dtype=jnp.float32)
    params = make_params(kp)

    # pack once (pure function of parameters) — hoisted out of the per-call path
    w_slab = jax.block_until_ready(pack_params(params))

    out = pma_complete_forward(X, w_slab)
    out = jax.block_until_ready(out)

    ref = reference_forward(X, params)
    assert out.shape == (B, K_SEEDS, D)
    # tolerance 2e-3: the only sub-f32 step is the approximate EUP reciprocal
    # in the softmax normalization (pl.reciprocal(..., approx=True)).
    assert jnp.allclose(out, ref, rtol=2e-3, atol=2e-3), "mismatch vs JAX reference"

    print("KERNEL_OK")
</pallas_src>

<mosaic_0001>
module attributes {stable_mosaic.version = 11 : i64} {
  func.func @pma_complete_kernel(%arg0: i32, %arg1: memref<4x8x32xf32, #tpu.memory_space<vmem>>, %arg2: memref<304x64xf32, #tpu.memory_space<vmem>>, %arg3: memref<32x32xf32, #tpu.memory_space<vmem>>) attributes {dimension_semantics = [#tpu.dimension_semantics<parallel>], iteration_bounds = array<i64: 2>, scalar_prefetch = 0 : i64, scratch_operands = 0 : i64, tpu.core_type = #tpu.core_type<tc>, window_params = [{transform_indices = @transform_0, window_bounds = array<i64: 4, 8, 32>}, {pipeline_mode = #tpu.pipeline_mode<synchronous>, transform_indices = @transform_1, window_bounds = array<i64: 304, 64>}, {transform_indices = @transform_2, window_bounds = array<i64: 32, 32>}]} {
    %c0 = arith.constant 0 : index
    %c0_0 = arith.constant 0 : index
    %0 = vector.load %arg2[%c0, %c0_0] : memref<304x64xf32, #tpu.memory_space<vmem>>, vector<32x64xf32>
    %c32 = arith.constant 32 : index
    %c0_1 = arith.constant 0 : index
    %1 = vector.load %arg2[%c32, %c0_1] : memref<304x64xf32, #tpu.memory_space<vmem>>, vector<32x64xf32>
    %c64 = arith.constant 64 : index
    %c0_2 = arith.constant 0 : index
    %2 = vector.load %arg2[%c64, %c0_2] : memref<304x64xf32, #tpu.memory_space<vmem>>, vector<32x32xf32>
    %c96 = arith.constant 96 : index
    %c0_3 = arith.constant 0 : index
    %3 = vector.load %arg2[%c96, %c0_3] : memref<304x64xf32, #tpu.memory_space<vmem>>, vector<32x32xf32>
    %c128 = arith.constant 128 : index
    %c0_4 = arith.constant 0 : index
    %4 = vector.load %arg2[%c128, %c0_4] : memref<304x64xf32, #tpu.memory_space<vmem>>, vector<32x64xf32>
    %c160 = arith.constant 160 : index
    %c0_5 = arith.constant 0 : index
    %5 = vector.load %arg2[%c160, %c0_5] : memref<304x64xf32, #tpu.memory_space<vmem>>, vector<64x64xf32>
    %c224 = arith.constant 224 : index
    %c0_6 = arith.constant 0 : index
    %6 = vector.load %arg2[%c224, %c0_6] : memref<304x64xf32, #tpu.memory_space<vmem>>, vector<64x32xf32>
    %c288 = arith.constant 288 : index
    %c0_7 = arith.constant 0 : index
    %7 = vector.load %arg2[%c288, %c0_7] : memref<304x64xf32, #tpu.memory_space<vmem>>, vector<16x64xf32>
    %8 = vector.extract_strided_slice %7 {offsets = [0, 0], sizes = [1, 32], strides = [1, 1]} : vector<16x64xf32> to vector<1x32xf32>
    %9 = vector.extract_strided_slice %7 {offsets = [1, 0], sizes = [1, 32], strides = [1, 1]} : vector<16x64xf32> to vector<1x32xf32>
    %10 = vector.extract_strided_slice %7 {offsets = [2, 0], sizes = [1, 32], strides = [1, 1]} : vector<16x64xf32> to vector<1x32xf32>
    %11 = vector.extract_strided_slice %7 {offsets = [3, 0], sizes = [1, 32], strides = [1, 1]} : vector<16x64xf32> to vector<1x32xf32>
    %12 = vector.extract_strided_slice %7 {offsets = [4, 0], sizes = [1, 64], strides = [1, 1]} : vector<16x64xf32> to vector<1x64xf32>
    %13 = vector.extract_strided_slice %7 {offsets = [5, 0], sizes = [1, 32], strides = [1, 1]} : vector<16x64xf32> to vector<1x32xf32>
    %14 = vector.extract_strided_slice %7 {offsets = [6, 0], sizes = [1, 32], strides = [1, 1]} : vector<16x64xf32> to vector<1x32xf32>
    %15 = vector.extract_strided_slice %7 {offsets = [7, 0], sizes = [1, 64], strides = [1, 1]} : vector<16x64xf32> to vector<1x64xf32>
    %16 = vector.extract_strided_slice %7 {offsets = [8, 0], sizes = [1, 64], strides = [1, 1]} : vector<16x64xf32> to vector<1x64xf32>
    %c0_8 = arith.constant 0 : index
    %c0_9 = arith.constant 0 : index
    %c0_10 = arith.constant 0 : index
    %17 = vector.load %arg1[%c0_8, %c0_9, %c0_10] : memref<4x8x32xf32, #tpu.memory_space<vmem>>, vector<4x8x32xf32>
    %18 = vector.shape_cast %17 : vector<4x8x32xf32> to vector<32x32xf32>
    %cst = arith.constant dense<0.000000e+00> : vector<32xf32>
    %19 = vector.multi_reduction <add>, %18, %cst [1] : vector<32x32xf32> to vector<32xf32>
    %20 = vector.shape_cast %19 : vector<32xf32> to vector<32x1xf32>
    %cst_11 = arith.constant 3.200000e+01 : f32
    %21 = vector.broadcast %cst_11 : f32 to vector<32x1xf32>
    %22 = arith.divf %20, %21 : vector<32x1xf32>
    %23 = vector.broadcast %22 : vector<32x1xf32> to vector<32x32xf32>
    %24 = arith.subf %18, %23 : vector<32x32xf32>
    %25 = arith.mulf %24, %24 : vector<32x32xf32>
    %cst_12 = arith.constant dense<0.000000e+00> : vector<32xf32>
    %26 = vector.multi_reduction <add>, %25, %cst_12 [1] : vector<32x32xf32> to vector<32xf32>
    %27 = vector.shape_cast %26 : vector<32xf32> to vector<32x1xf32>
    %cst_13 = arith.constant 3.200000e+01 : f32
    %28 = vector.broadcast %cst_13 : f32 to vector<32x1xf32>
    %29 = arith.divf %27, %28 : vector<32x1xf32>
    %30 = vector.broadcast %22 : vector<32x1xf32> to vector<32x32xf32>
    %31 = arith.subf %18, %30 : vector<32x32xf32>
    %cst_14 = arith.constant 9.99999974E-6 : f32
    %32 = vector.broadcast %cst_14 : f32 to vector<32x1xf32>
    %33 = arith.addf %29, %32 : vector<32x1xf32>
    %34 = math.rsqrt %33 : vector<32x1xf32>
    %35 = vector.broadcast %34 : vector<32x1xf32> to vector<32x32xf32>
    %36 = arith.mulf %31, %35 : vector<32x32xf32>
    %37 = vector.broadcast %8 : vector<1x32xf32> to vector<32x32xf32>
    %38 = arith.mulf %36, %37 : vector<32x32xf32>
    %39 = vector.broadcast %9 : vector<1x32xf32> to vector<32x32xf32>
    %40 = arith.addf %38, %39 : vector<32x32xf32>
    %cst_15 = arith.constant dense<0.000000e+00> : vector<32x64xf32>
    %41 = tpu.matmul %40, %1, %cst_15 {dimension_numbers = #tpu.dot_dimension_numbers<[1], [0], [0], [1], [0, 0, 1, 1], [], []>} : vector<32x32xf32>, vector<32x64xf32>, vector<32x64xf32> -> vector<32x64xf32>
    %42 = vector.broadcast %12 : vector<1x64xf32> to vector<32x64xf32>
    %43 = arith.addf %41, %42 : vector<32x64xf32>
    %44 = vector.extract_strided_slice %43 {offsets = [0, 0], sizes = [8, 64], strides = [1, 1]} : vector<32x64xf32> to vector<8x64xf32>
    %cst_16 = arith.constant dense<0.000000e+00> : vector<32x8xf32>
    %45 = tpu.matmul %0, %44, %cst_16 {dimension_numbers = #tpu.dot_dimension_numbers<[1], [1], [0], [0], [0, 0, 1, 0], [], []>} : vector<32x64xf32>, vector<8x64xf32>, vector<32x8xf32> -> vector<32x8xf32>
    %cst_17 = arith.constant dense<0xFF800000> : vector<32xf32>
    %46 = vector.multi_reduction <maximumf>, %45, %cst_17 [1] : vector<32x8xf32> to vector<32xf32>
    %47 = vector.shape_cast %46 : vector<32xf32> to vector<32x1xf32>
    %48 = vector.broadcast %47 : vector<32x1xf32> to vector<32x8xf32>
    %49 = arith.subf %45, %48 : vector<32x8xf32>
    %50 = math.exp %49 : vector<32x8xf32>
    %cst_18 = arith.constant dense<0.000000e+00> : vector<32xf32>
    %51 = vector.multi_reduction <add>, %50, %cst_18 [1] : vector<32x8xf32> to vector<32xf32>
    %52 = vector.shape_cast %51 : vector<32xf32> to vector<32x1xf32>
    %53 = tpu.reciprocal %52 {approx = true} : vector<32x1xf32> -> vector<32x1xf32>
    %54 = vector.broadcast %53 : vector<32x1xf32> to vector<32x8xf32>
    %55 = arith.mulf %50, %54 : vector<32x8xf32>
    %56 = vector.extract_strided_slice %44 {offsets = [0, 0], sizes = [8, 32], strides = [1, 1]} : vector<8x64xf32> to vector<8x32xf32>
    %cst_19 = arith.constant dense<0.000000e+00> : vector<32x32xf32>
    %57 = tpu.matmul %55, %56, %cst_19 {dimension_numbers = #tpu.dot_dimension_numbers<[1], [0], [0], [1], [0, 0, 1, 1], [], []>} : vector<32x8xf32>, vector<8x32xf32>, vector<32x32xf32> -> vector<32x32xf32>
    %58 = arith.mulf %57, %3 : vector<32x32xf32>
    %59 = vector.extract_strided_slice %58 {offsets = [0, 0], sizes = [8, 32], strides = [1, 1]} : vector<32x32xf32> to vector<8x32xf32>
    %60 = vector.extract_strided_slice %58 {offsets = [8, 0], sizes = [8, 32], strides = [1, 1]} : vector<32x32xf32> to vector<8x32xf32>
    %61 = arith.addf %59, %60 : vector<8x32xf32>
    %62 = vector.extract_strided_slice %58 {offsets = [16, 0], sizes = [8, 32], strides = [1, 1]} : vector<32x32xf32> to vector<8x32xf32>
    %63 = arith.addf %61, %62 : vector<8x32xf32>
    %64 = vector.extract_strided_slice %58 {offsets = [24, 0], sizes = [8, 32], strides = [1, 1]} : vector<32x32xf32> to vector<8x32xf32>
    %65 = arith.addf %63, %64 : vector<8x32xf32>
    %66 = vector.extract_strided_slice %43 {offsets = [8, 0], sizes = [8, 64], strides = [1, 1]} : vector<32x64xf32> to vector<8x64xf32>
    %cst_20 = arith.constant dense<0.000000e+00> : vector<32x8xf32>
    %67 = tpu.matmul %0, %66, %cst_20 {dimension_numbers = #tpu.dot_dimension_numbers<[1], [1], [0], [0], [0, 0, 1, 0], [], []>} : vector<32x64xf32>, vector<8x64xf32>, vector<32x8xf32> -> vector<32x8xf32>
    %cst_21 = arith.constant dense<0xFF800000> : vector<32xf32>
    %68 = vector.multi_reduction <maximumf>, %67, %cst_21 [1] : vector<32x8xf32> to vector<32xf32>
    %69 = vector.shape_cast %68 : vector<32xf32> to vector<32x1xf32>
    %70 = vector.broadcast %69 : vector<32x1xf32> to vector<32x8xf32>
    %71 = arith.subf %67, %70 : vector<32x8xf32>
    %72 = math.exp %71 : vector<32x8xf32>
    %cst_22 = arith.constant dense<0.000000e+00> : vector<32xf32>
    %73 = vector.multi_reduction <add>, %72, %cst_22 [1] : vector<32x8xf32> to vector<32xf32>
    %74 = vector.shape_cast %73 : vector<32xf32> to vector<32x1xf32>
    %75 = tpu.reciprocal %74 {approx = true} : vector<32x1xf32> -> vector<32x1xf32>
    %76 = vector.broadcast %75 : vector<32x1xf32> to vector<32x8xf32>
    %77 = arith.mulf %72, %76 : vector<32x8xf32>
    %78 = vector.extract_strided_slice %66 {offsets = [0, 0], sizes = [8, 32], strides = [1, 1]} : vector<8x64xf32> to vector<8x32xf32>
    %cst_23 = arith.constant dense<0.000000e+00> : vector<32x32xf32>
    %79 = tpu.matmul %77, %78, %cst_23 {dimension_numbers = #tpu.dot_dimension_numbers<[1], [0], [0], [1], [0, 0, 1, 1], [], []>} : vector<32x8xf32>, vector<8x32xf32>, vector<32x32xf32> -> vector<32x32xf32>
    %80 = arith.mulf %79, %3 : vector<32x32xf32>
    %81 = vector.extract_strided_slice %80 {offsets = [0, 0], sizes = [8, 32], strides = [1, 1]} : vector<32x32xf32> to vector<8x32xf32>
    %82 = vector.extract_strided_slice %80 {offsets = [8, 0], sizes = [8, 32], strides = [1, 1]} : vector<32x32xf32> to vector<8x32xf32>
    %83 = arith.addf %81, %82 : vector<8x32xf32>
    %84 = vector.extract_strided_slice %80 {offsets = [16, 0], sizes = [8, 32], strides = [1, 1]} : vector<32x32xf32> to vector<8x32xf32>
    %85 = arith.addf %83, %84 : vector<8x32xf32>
    %86 = vector.extract_strided_slice %80 {offsets = [24, 0], sizes = [8, 32], strides = [1, 1]} : vector<32x32xf32> to vector<8x32xf32>
    %87 = arith.addf %85, %86 : vector<8x32xf32>
    %88 = vector.extract_strided_slice %43 {offsets = [16, 0], sizes = [8, 64], strides = [1, 1]} : vector<32x64xf32> to vector<8x64xf32>
    %cst_24 = arith.constant dense<0.000000e+00> : vector<32x8xf32>
    %89 = tpu.matmul %0, %88, %cst_24 {dimension_numbers = #tpu.dot_dimension_numbers<[1], [1], [0], [0], [0, 0, 1, 0], [], []>} : vector<32x64xf32>, vector<8x64xf32>, vector<32x8xf32> -> vector<32x8xf32>
    %cst_25 = arith.constant dense<0xFF800000> : vector<32xf32>
    %90 = vector.multi_reduction <maximumf>, %89, %cst_25 [1] : vector<32x8xf32> to vector<32xf32>
    %91 = vector.shape_cast %90 : vector<32xf32> to vector<32x1xf32>
    %92 = vector.broadcast %91 : vector<32x1xf32> to vector<32x8xf32>
    %93 = arith.subf %89, %92 : vector<32x8xf32>
    %94 = math.exp %93 : vector<32x8xf32>
    %cst_26 = arith.constant dense<0.000000e+00> : vector<32xf32>
    %95 = vector.multi_reduction <add>, %94, %cst_26 [1] : vector<32x8xf32> to vector<32xf32>
    %96 = vector.shape_cast %95 : vector<32xf32> to vector<32x1xf32>
    %97 = tpu.reciprocal %96 {approx = true} : vector<32x1xf32> -> vector<32x1xf32>
    %98 = vector.broadcast %97 : vector<32x1xf32> to vector<32x8xf32>
    %99 = arith.mulf %94, %98 : vector<32x8xf32>
    %100 = vector.extract_strided_slice %88 {offsets = [0, 0], sizes = [8, 32], strides = [1, 1]} : vector<8x64xf32> to vector<8x32xf32>
    %cst_27 = arith.constant dense<0.000000e+00> : vector<32x32xf32>
    %101 = tpu.matmul %99, %100, %cst_27 {dimension_numbers = #tpu.dot_dimension_numbers<[1], [0], [0], [1], [0, 0, 1, 1], [], []>} : vector<32x8xf32>, vector<8x32xf32>, vector<32x32xf32> -> vector<32x32xf32>
    %102 = arith.mulf %101, %3 : vector<32x32xf32>
    %103 = vector.extract_strided_slice %102 {offsets = [0, 0], sizes = [8, 32], strides = [1, 1]} : vector<32x32xf32> to vector<8x32xf32>
    %104 = vector.extract_strided_slice %102 {offsets = [8, 0], sizes = [8, 32], strides = [1, 1]} : vector<32x32xf32> to vector<8x32xf32>
    %105 = arith.addf %103, %104 : vector<8x32xf32>
    %106 = vector.extract_strided_slice %102 {offsets = [16, 0], sizes = [8, 32], strides = [1, 1]} : vector<32x32xf32> to vector<8x32xf32>
    %107 = arith.addf %105, %106 : vector<8x32xf32>
    %108 = vector.extract_strided_slice %102 {offsets = [24, 0], sizes = [8, 32], strides = [1, 1]} : vector<32x32xf32> to vector<8x32xf32>
    %109 = arith.addf %107, %108 : vector<8x32xf32>
    %110 = vector.extract_strided_slice %43 {offsets = [24, 0], sizes = [8, 64], strides = [1, 1]} : vector<32x64xf32> to vector<8x64xf32>
    %cst_28 = arith.constant dense<0.000000e+00> : vector<32x8xf32>
    %111 = tpu.matmul %0, %110, %cst_28 {dimension_numbers = #tpu.dot_dimension_numbers<[1], [1], [0], [0], [0, 0, 1, 0], [], []>} : vector<32x64xf32>, vector<8x64xf32>, vector<32x8xf32> -> vector<32x8xf32>
    %cst_29 = arith.constant dense<0xFF800000> : vector<32xf32>
    %112 = vector.multi_reduction <maximumf>, %111, %cst_29 [1] : vector<32x8xf32> to vector<32xf32>
    %113 = vector.shape_cast %112 : vector<32xf32> to vector<32x1xf32>
    %114 = vector.broadcast %113 : vector<32x1xf32> to vector<32x8xf32>
    %115 = arith.subf %111, %114 : vector<32x8xf32>
    %116 = math.exp %115 : vector<32x8xf32>
    %cst_30 = arith.constant dense<0.000000e+00> : vector<32xf32>
    %117 = vector.multi_reduction <add>, %116, %cst_30 [1] : vector<32x8xf32> to vector<32xf32>
    %118 = vector.shape_cast %117 : vector<32xf32> to vector<32x1xf32>
    %119 = tpu.reciprocal %118 {approx = true} : vector<32x1xf32> -> vector<32x1xf32>
    %120 = vector.broadcast %119 : vector<32x1xf32> to vector<32x8xf32>
    %121 = arith.mulf %116, %120 : vector<32x8xf32>
    %122 = vector.extract_strided_slice %110 {offsets = [0, 0], sizes = [8, 32], strides = [1, 1]} : vector<8x64xf32> to vector<8x32xf32>
    %cst_31 = arith.constant dense<0.000000e+00> : vector<32x32xf32>
    %123 = tpu.matmul %121, %122, %cst_31 {dimension_numbers = #tpu.dot_dimension_numbers<[1], [0], [0], [1], [0, 0, 1, 1], [], []>} : vector<32x8xf32>, vector<8x32xf32>, vector<32x32xf32> -> vector<32x32xf32>
    %124 = arith.mulf %123, %3 : vector<32x32xf32>
    %125 = vector.extract_strided_slice %124 {offsets = [0, 0], sizes = [8, 32], strides = [1, 1]} : vector<32x32xf32> to vector<8x32xf32>
    %126 = vector.extract_strided_slice %124 {offsets = [8, 0], sizes = [8, 32], strides = [1, 1]} : vector<32x32xf32> to vector<8x32xf32>
    %127 = arith.addf %125, %126 : vector<8x32xf32>
    %128 = vector.extract_strided_slice %124 {offsets = [16, 0], sizes = [8, 32], strides = [1, 1]} : vector<32x32xf32> to vector<8x32xf32>
    %129 = arith.addf %127, %128 : vector<8x32xf32>
    %130 = vector.extract_strided_slice %124 {offsets = [24, 0], sizes = [8, 32], strides = [1, 1]} : vector<32x32xf32> to vector<8x32xf32>
    %131 = arith.addf %129, %130 : vector<8x32xf32>
    %132 = tpu.concatenate %65, %87, %109, %131 in 0 : vector<8x32xf32>, vector<8x32xf32>, vector<8x32xf32>, vector<8x32xf32> -> vector<32x32xf32>
    %cst_32 = arith.constant dense<0.000000e+00> : vector<32x32xf32>
    %133 = tpu.matmul %132, %2, %cst_32 {dimension_numbers = #tpu.dot_dimension_numbers<[1], [0], [0], [1], [0, 0, 1, 1], [], []>} : vector<32x32xf32>, vector<32x32xf32>, vector<32x32xf32> -> vector<32x32xf32>
    %134 = vector.broadcast %13 : vector<1x32xf32> to vector<32x32xf32>
    %135 = arith.addf %133, %134 : vector<32x32xf32>
    %cst_33 = arith.constant dense<0.000000e+00> : vector<32xf32>
    %136 = vector.multi_reduction <add>, %135, %cst_33 [1] : vector<32x32xf32> to vector<32xf32>
    %137 = vector.shape_cast %136 : vector<32xf32> to vector<32x1xf32>
    %cst_34 = arith.constant 3.200000e+01 : f32
    %138 = vector.broadcast %cst_34 : f32 to vector<32x1xf32>
    %139 = arith.divf %137, %138 : vector<32x1xf32>
    %140 = vector.broadcast %139 : vector<32x1xf32> to vector<32x32xf32>
    %141 = arith.subf %135, %140 : vector<32x32xf32>
    %142 = arith.mulf %141, %141 : vector<32x32xf32>
    %cst_35 = arith.constant dense<0.000000e+00> : vector<32xf32>
    %143 = vector.multi_reduction <add>, %142, %cst_35 [1] : vector<32x32xf32> to vector<32xf32>
    %144 = vector.shape_cast %143 : vector<32xf32> to vector<32x1xf32>
    %cst_36 = arith.constant 3.200000e+01 : f32
    %145 = vector.broadcast %cst_36 : f32 to vector<32x1xf32>
    %146 = arith.divf %144, %145 : vector<32x1xf32>
    %147 = vector.broadcast %139 : vector<32x1xf32> to vector<32x32xf32>
    %148 = arith.subf %135, %147 : vector<32x32xf32>
    %cst_37 = arith.constant 9.99999974E-6 : f32
    %149 = vector.broadcast %cst_37 : f32 to vector<32x1xf32>
    %150 = arith.addf %146, %149 : vector<32x1xf32>
    %151 = math.rsqrt %150 : vector<32x1xf32>
    %152 = vector.broadcast %151 : vector<32x1xf32> to vector<32x32xf32>
    %153 = arith.mulf %148, %152 : vector<32x32xf32>
    %154 = vector.broadcast %10 : vector<1x32xf32> to vector<32x32xf32>
    %155 = arith.mulf %153, %154 : vector<32x32xf32>
    %156 = vector.broadcast %11 : vector<1x32xf32> to vector<32x32xf32>
    %157 = arith.addf %155, %156 : vector<32x32xf32>
    %cst_38 = arith.constant dense<0.000000e+00> : vector<32x64xf32>
    %158 = tpu.matmul %157, %4, %cst_38 {dimension_numbers = #tpu.dot_dimension_numbers<[1], [0], [0], [1], [0, 0, 1, 1], [], []>} : vector<32x32xf32>, vector<32x64xf32>, vector<32x64xf32> -> vector<32x64xf32>
    %159 = vector.broadcast %15 : vector<1x64xf32> to vector<32x64xf32>
    %160 = arith.addf %158, %159 : vector<32x64xf32>
    %161 = arith.mulf %160, %160 : vector<32x64xf32>
    %162 = arith.mulf %160, %161 : vector<32x64xf32>
    %cst_39 = arith.constant 4.471500e-02 : f32
    %163 = vector.broadcast %cst_39 : f32 to vector<32x64xf32>
    %164 = arith.mulf %163, %162 : vector<32x64xf32>
    %165 = arith.addf %160, %164 : vector<32x64xf32>
    %cst_40 = arith.constant 0.797884583 : f32
    %166 = vector.broadcast %cst_40 : f32 to vector<32x64xf32>
    %167 = arith.mulf %166, %165 : vector<32x64xf32>
    %168 = math.tanh %167 : vector<32x64xf32>
    %cst_41 = arith.constant 1.000000e+00 : f32
    %169 = vector.broadcast %cst_41 : f32 to vector<32x64xf32>
    %170 = arith.addf %169, %168 : vector<32x64xf32>
    %cst_42 = arith.constant 5.000000e-01 : f32
    %171 = vector.broadcast %cst_42 : f32 to vector<32x64xf32>
    %172 = arith.mulf %171, %170 : vector<32x64xf32>
    %173 = arith.mulf %160, %172 : vector<32x64xf32>
    %cst_43 = arith.constant dense<0.000000e+00> : vector<32x64xf32>
    %174 = tpu.matmul %173, %5, %cst_43 {dimension_numbers = #tpu.dot_dimension_numbers<[1], [0], [0], [1], [0, 0, 1, 1], [], []>} : vector<32x64xf32>, vector<64x64xf32>, vector<32x64xf32> -> vector<32x64xf32>
    %175 = vector.broadcast %16 : vector<1x64xf32> to vector<32x64xf32>
    %176 = arith.addf %174, %175 : vector<32x64xf32>
    %177 = arith.mulf %176, %176 : vector<32x64xf32>
    %178 = arith.mulf %176, %177 : vector<32x64xf32>
    %cst_44 = arith.constant 4.471500e-02 : f32
    %179 = vector.broadcast %cst_44 : f32 to vector<32x64xf32>
    %180 = arith.mulf %179, %178 : vector<32x64xf32>
    %181 = arith.addf %176, %180 : vector<32x64xf32>
    %cst_45 = arith.constant 0.797884583 : f32
    %182 = vector.broadcast %cst_45 : f32 to vector<32x64xf32>
    %183 = arith.mulf %182, %181 : vector<32x64xf32>
    %184 = math.tanh %183 : vector<32x64xf32>
    %cst_46 = arith.constant 1.000000e+00 : f32
    %185 = vector.broadcast %cst_46 : f32 to vector<32x64xf32>
    %186 = arith.addf %185, %184 : vector<32x64xf32>
    %cst_47 = arith.constant 5.000000e-01 : f32
    %187 = vector.broadcast %cst_47 : f32 to vector<32x64xf32>
    %188 = arith.mulf %187, %186 : vector<32x64xf32>
    %189 = arith.mulf %176, %188 : vector<32x64xf32>
    %cst_48 = arith.constant dense<0.000000e+00> : vector<32x32xf32>
    %190 = tpu.matmul %189, %6, %cst_48 {dimension_numbers = #tpu.dot_dimension_numbers<[1], [0], [0], [1], [0, 0, 1, 1], [], []>} : vector<32x64xf32>, vector<64x32xf32>, vector<32x32xf32> -> vector<32x32xf32>
    %191 = vector.broadcast %14 : vector<1x32xf32> to vector<32x32xf32>
    %192 = arith.addf %190, %191 : vector<32x32xf32>
    %193 = arith.addf %135, %192 : vector<32x32xf32>
    %c0_49 = arith.constant 0 : index
    %c0_50 = arith.constant 0 : index
    %194 = vector.load %arg3[%c0_49, %c0_50] : memref<32x32xf32, #tpu.memory_space<vmem>>, vector<32x32xf32>
    tpu.vector_store %arg3[%c0_49, %c0_50], %193 {strides = array<i32>} : memref<32x32xf32, #tpu.memory_space<vmem>>, vector<32x32xf32>,
    return
  }
  func.func @transform_0(%arg0: i32) -> (i32, i32, i32) {
    %c0_i32 = arith.constant 0 : i32
    %c0_i32_0 = arith.constant 0 : i32
    %c0_i32_1 = arith.constant 0 : i32
    return %arg0, %c0_i32, %c0_i32_0 : i32, i32, i32
  }
  func.func @transform_1(%arg0: i32) -> (i32, i32) {
    %c0_i32 = arith.constant 0 : i32
    %c0_i32_0 = arith.constant 0 : i32
    %c0_i32_1 = arith.constant 0 : i32
    return %c0_i32, %c0_i32_0 : i32, i32
  }
  func.func @transform_2(%arg0: i32) -> (i32, i32) {
    %c0_i32 = arith.constant 0 : i32
    %c0_i32_0 = arith.constant 0 : i32
    return %arg0, %c0_i32 : i32, i32
  }
}

</mosaic_0001>

<bundles_post_ra>
// kernel: pma_complete_forward.1
= control target key start
LH: loop header
LB: loop body
LE: loop exit
PB: predicated region body
PF: predicated region fallthrough
CT: control target
= control target key end

     0   :  { %s1451_s9 = smov 0   ;;  %s1951_s0 = inlined_call_operand.vmem [shape: f32[8,8,32], index: 0, kind: input, shape index: {}]   ;;  %s1952_s1 = inlined_call_operand.vmem [shape: f32[304,64], index: 1, kind: input, shape index: {}]   ;;  %s1953_s2 = inlined_call_operand.vmem [shape: f32[64,32], index: 2, kind: output, shape index: {}]  }
   0x1 LB: > { %s1249_s10 = sadd.s32 4294967295, %s1433_s9   ;;  %p1253_p0 = scmp.ge.s32.totalorder %s1433_s9, 1  ;;  %s1433_s9 = sphi %s1451_s9, %s12_s9  }
   0x2   : > { %p113_p1 = scmp.lt.s32.totalorder %s1433_s9, 3 }
   0x4   : > { %p114_p2 = pnand %p1253_p0, %p113_p1 }
   0x5   : > { %s1254_s11 = sshll.u32 (!%p114_p2), %s1249_s10, 2 }
   0x6   : > { %117 = sbr.rel (%p114_p2) target bundleno = 2209 (0x8a1), region = 28  ;;  %p136_p3 = scmp.lt.s32.totalorder (!%p114_p2), %s1254_s11, 7 }
   0xb   : > { %s1955_s11 = smov (!%p136_p3, %s1254_s11), 7  ;;  %vm189_vm0 = vcmask 261120   ;;  %v1435_v2 = vmov 32.0   ;;  %v154_v16 = vld [vmem:[%s1952_s1 + $0x38] sm:$0xff]  ;;  %v153_v18 = vld [vmem:[%s1952_s1 + $0x30] sm:$0xff]  ;;  %v152_v20 = vld [vmem:[%s1952_s1 + $0x28] sm:$0xff] }
   0xc   : > { %s1255_s12 = sshll.u32 %s1955_s11, 3  ;;  %1328 = vrcp.f32 %v1435_v2  ;;  %320 = vmatpush.msra.mxu0 %v154_v16  ;;  %v151_v23 = vld [vmem:[%s1952_s1 + $0x20] sm:$0xff]  ;;  %vm337_vm5 = vcmask 523264   ;;  %v1536_v59 = vld [vmem:[%s1952_s1 + $0x8] sm:$0xff]  ;;  %v1543_v60 = vld [vmem:[%s1952_s1 + $0x10] sm:$0xff]  ;;  %vm382_vm15 = vcmask 64512  }
   0xd   : > { %s139_s15 = scalar_lea.vmem %s1951_s0, %s1255_s12  ;;  %v1497_v37 = vld [vmem:[%s1952_s1 + $0x120] sm:$0xff]  ;;  %s1930_s21 = scalar_lea.vmem %s1953_s2, %s1255_s12 }
   0xe   : > { %v185_v0 = vld [vmem:[%s139_s15] sm:$0xff]  ;;  %v186_v3 = vld [vmem:[%s139_s15 + $0x8] sm:$0xff]  ;;  %v187_v17 = vld [vmem:[%s139_s15 + $0x10] sm:$0xff]  ;;  %321 = vmatpush.msra.mxu0 %v153_v18  ;;  %v1500_v39 = vperm.slane %v1497_v37, 0  ;;  %v1503_v42 = vperm.slane %v1497_v37, 1  ;;  %v1521_v55 = vperm.slane %v1497_v37, 4 }
   0xf   : > { %v190_v1 = vsel %vm189_vm0, %v185_v0, 0.0  ;;  %v193_v4 = vsel %vm189_vm0, %v186_v3, 0.0  ;;  %v196_v19 = vsel %vm189_vm0, %v187_v17, 0.0  ;;  %v188_v21 = vld [vmem:[%s139_s15 + $0x18] sm:$0xff]  ;;  %v1529_v58 = vld [vmem:[%s1952_s1] sm:$0xff] }
  0x10   : > { %191 = vadd.xlane.f32.xlu0 %v190_v1  ;;  %194 = vadd.xlane.f32.xlu1 %v193_v4  ;;  %v199_v22 = vsel %vm189_vm0, %v188_v21, 0.0 }
  0x11   : > { %200 = vadd.xlane.f32.xlu2 %v199_v22  ;;  %322 = vmatpush.msra.mxu0 %v152_v20 }
  0x12   : > { %v1329_v5 = vpop.eup %1328 }
  0x13   : > { %v203_v6 = vmul.f32 32.0, %v1329_v5  ;;  %vm207_vm1 = vweird.f32 %v1329_v5  ;;  %323 = vmatpush.msra.mxu0 %v151_v23 }
  0x15   : > { %v204_v7 = vsub.f32 1.0, %v203_v6 }
  0x17   : > { %v205_v8 = vmul.f32 %v1329_v5, %v204_v7 }
  0x18   : > { %197 = vadd.xlane.f32.xlu1 %v196_v19 }
  0x19   : > { %v206_v9 = vadd.f32 %v1329_v5, %v205_v8 }
  0x1b   : > { %v1469_v10 = vsel %vm207_vm1, %v1329_v5, %v206_v9 }
  0x83   : > { %v192_v11 = vpop.xlane.xlu0 %191  ;;  %v195_v24 = vpop.xlane.xlu1 %194 }
  0x84   : > { %v209_v12 = vmul.f32 %v1469_v10, %v192_v11  ;;  %v210_v25 = vmul.f32 %v1469_v10, %v195_v24  ;;  %v201_v47 = vpop.xlane.xlu2 %200 }
  0x85   : > { %v212_v48 = vmul.f32 %v1469_v10, %v201_v47 }
  0x86   : > { %v213_v13 = vsub.f32 %v185_v0, %v209_v12  ;;  %v1488_v27 = vsub.f32 %v186_v3, %v210_v25 }
  0x87   : > { %v1512_v50 = vsub.f32 %v188_v21, %v212_v48 }
  0x88   : > { %v217_v14 = vmul.f32 %v213_v13, %v213_v13  ;;  %v218_v29 = vmul.f32 %v1488_v27, %v1488_v27 }
  0x89   : > { %v220_v52 = vmul.f32 %v1512_v50, %v1512_v50 }
  0x8a   : > { %v221_v15 = vsel %vm189_vm0, %v217_v14, 0.0  ;;  %v224_v31 = vsel %vm189_vm0, %v218_v29, 0.0 }
  0x8b   : > { %222 = vadd.xlane.f32.xlu0 %v221_v15  ;;  %225 = vadd.xlane.f32.xlu2 %v224_v31  ;;  %v198_v45 = vpop.xlane.xlu1 %197  ;;  %v230_v54 = vsel %vm189_vm0, %v220_v52, 0.0 }
  0x8c   : > { %v211_v46 = vmul.f32 %v1469_v10, %v198_v45  ;;  %231 = vadd.xlane.f32.xlu1 %v230_v54 }
  0x8e   : > { %v1510_v49 = vsub.f32 %v187_v17, %v211_v46 }
  0x90   : > { %v219_v51 = vmul.f32 %v1510_v49, %v1510_v49 }
  0x92   : > { %v227_v53 = vsel %vm189_vm0, %v219_v51, 0.0 }
  0x93   : > { %228 = vadd.xlane.f32.xlu0 %v227_v53 }
  0xfe   : > { %v223_v26 = vpop.xlane.xlu0 %222  ;;  %v226_v61 = vpop.xlane.xlu2 %225 }
  0xff   : > { %v233_v28 = vmul.f32 %v223_v26, %v1469_v10  ;;  %v234_v62 = vmul.f32 %v226_v61, %v1469_v10 }
 0x101   : > { %v237_v30 = vadd.f32 1e-05, %v233_v28  ;;  %v238_v63 = vadd.f32 1e-05, %v234_v62 }
 0x103   : > { %1330 = vrsqrt.f32 %v237_v30  ;;  %vm247_vm3 = vweird.f32 %v237_v30  ;;  %vm257_vm6 = vweird.f32 %v238_v63 }
 0x104   : > { %1332 = vrsqrt.f32 %v238_v63 }
 0x106   : > { %v229_v11 = vpop.xlane.xlu0 %228 }
 0x107   : > { %v235_v12 = vmul.f32 %v229_v11, %v1469_v10 }
 0x109   : > { %v1331_v32 = vpop.eup %1330  ;;  %v239_v15 = vadd.f32 1e-05, %v235_v12 }
 0x10a   : > { %v242_v33 = vmul.f32 %v1331_v32, %v237_v30  ;;  %vm248_vm2 = vweird.f32 %v1331_v32  ;;  %v1333_v0 = vpop.eup %1332 }
 0x10b   : > { %vm249_vm4 = vmor %vm247_vm3, %vm248_vm2  ;;  %v252_v1 = vmul.f32 %v1333_v0, %v238_v63  ;;  %vm258_vm7 = vweird.f32 %v1333_v0  ;;  %1334 = vrsqrt.f32 %v239_v15  ;;  %vm267_vm9 = vweird.f32 %v239_v15 }
 0x10c   : > { %v243_v34 = vmul.f32 %v1331_v32, %v242_v33  ;;  %vm259_vm8 = vmor %vm257_vm6, %vm258_vm7 }
 0x10d   : > { %v253_v2 = vmul.f32 %v1333_v0, %v252_v1 }
 0x10e   : > { %v244_v35 = vmul.f32 0.5, %v243_v34 }
 0x10f   : > { %v254_v3 = vmul.f32 0.5, %v253_v2 }
 0x110   : > { %v245_v36 = vsub.f32 1.5, %v244_v35 }
 0x111   : > { %v255_v4 = vsub.f32 1.5, %v254_v3  ;;  %v1335_v17 = vpop.eup %1334 }
 0x112   : > { %v246_v38 = vmul.f32 %v1331_v32, %v245_v36  ;;  %v262_v19 = vmul.f32 %v1335_v17, %v239_v15  ;;  %vm268_vm10 = vweird.f32 %v1335_v17 }
 0x113   : > { %v256_v5 = vmul.f32 %v1333_v0, %v255_v4  ;;  %vm269_vm11 = vmor %vm267_vm9, %vm268_vm10 }
 0x114   : > { %v250_v40 = vsel %vm249_vm4, %v1331_v32, %v246_v38  ;;  %v263_v21 = vmul.f32 %v1335_v17, %v262_v19 }
 0x115   : > { %v281_v41 = vmul.f32 %v250_v40, %v213_v13  ;;  %v260_v6 = vsel %vm259_vm8, %v1333_v0, %v256_v5  ;;  %v232_v13 = vpop.xlane.xlu1 %231 }
 0x116   : > { %v282_v7 = vmul.f32 %v260_v6, %v1488_v27  ;;  %v236_v14 = vmul.f32 %v232_v13, %v1469_v10  ;;  %v264_v23 = vmul.f32 0.5, %v263_v21 }
 0x117   : > { %v286_v43 = vmul.f32 %v1500_v39, %v281_v41 }
 0x118   : > { %v287_v8 = vmul.f32 %v1500_v39, %v282_v7  ;;  %v240_v16 = vadd.f32 1e-05, %v236_v14  ;;  %v265_v24 = vsub.f32 1.5, %v264_v23 }
 0x119   : > { %v291_v44 = vadd.f32 %v1503_v42, %v286_v43 }
 0x11a   : > { %v292_v9 = vadd.f32 %v1503_v42, %v287_v8  ;;  %1336 = vrsqrt.f32 %v240_v16  ;;  %v266_v26 = vmul.f32 %v1335_v17, %v265_v24  ;;  %vm277_vm12 = vweird.f32 %v240_v16 }
 0x11b   : > { %1258 = vmatmul.msk.f32.vlgmr.msra.gmra.mxu0 %vm189_vm0, %v291_v44 }
 0x11c   : > { %v270_v27 = vsel %vm269_vm11, %v1335_v17, %v266_v26 }
 0x11d   : > { %v283_v29 = vmul.f32 %v270_v27, %v1510_v49 }
 0x11f   : > { %v288_v30 = vmul.f32 %v1500_v39, %v283_v29  ;;  %v1625_v29 = vld [vmem:[%s1952_s1 + $0x60] sm:$0xff] }
 0x120   : > { %v1337_v18 = vpop.eup %1336 }
 0x121   : > { %v272_v20 = vmul.f32 %v1337_v18, %v240_v16  ;;  %vm278_vm13 = vweird.f32 %v1337_v18  ;;  %v293_v32 = vadd.f32 %v1503_v42, %v288_v30 }
 0x122   : > { %vm279_vm14 = vmor %vm277_vm12, %vm278_vm13 }
 0x123   : > { %1259 = vmatmul.msk.f32.gmra.mxu0 %vm189_vm0, %v292_v9  ;;  %v273_v22 = vmul.f32 %v1337_v18, %v272_v20 }
 0x125   : > { %v274_v25 = vmul.f32 0.5, %v273_v22 }
 0x127   : > { %v275_v28 = vsub.f32 1.5, %v274_v25 }
 0x129   : > { %v276_v31 = vmul.f32 %v1337_v18, %v275_v28 }
 0x12b   : > { %1260 = vmatmul.msk.f32.gmra.mxu0 %vm189_vm0, %v293_v32  ;;  %v280_v33 = vsel %vm279_vm14, %v1337_v18, %v276_v31 }
 0x12c   : > { %v284_v34 = vmul.f32 %v280_v33, %v1512_v50 }
 0x12e   : > { %v289_v35 = vmul.f32 %v1500_v39, %v284_v34 }
 0x130   : > { %v294_v36 = vadd.f32 %v1503_v42, %v289_v35  ;;  %v1570_v42 = vld [vmem:[%s1952_s1 + $0x18] sm:$0xff] }
 0x133   : > { %1261 = vmatmul.msk.f32.gmra.mxu0 %vm189_vm0, %v294_v36 }
 0x198   : > { %v325_v56 = vpop.f32.mrf.mxu0 }
 0x199   : > { %v326_v57 = vadd.f32 %v325_v56, %v1521_v55 }
 0x19b   : > { %1262 = vmatpush.xpose.msk.msra.mxu1 %vm337_vm5, %v326_v57  ;;  %1316 = vmatpush.xpose.msk.msra.mxu3 %vm337_vm5, %v326_v57 }
 0x19c   : > { %454 = vmatpush.msrb.mxu0 %v326_v57  ;;  %1318 = vmatpush.msra.mxu2 %v326_v57 }
 0x19e   : > { %1263 = vmatmul.msk.f32.vlgmr.msra.gmra.mxu1 %vm337_vm5, %v1529_v58  ;;  %1266 = vmatmul.msk.f32.vlgmr.msra.gmra.mxu3 %vm337_vm5, %v1570_v42 }
 0x19f   : > { %1317 = vmatpush.msrb.mxu1 %v326_v57 }
 0x1a0   : > { %v328_v46 = vpop.f32.mrf.mxu0 }
 0x1a1   : > { %v329_v39 = vadd.f32 %v328_v46, %v1521_v55 }
 0x1a3   : > { %1271 = vmatpush.xpose.msk.msrb.mxu3 %vm337_vm5, %v329_v39  ;;  %578 = vmatpush.msrb.mxu2 %v329_v39 }
 0x1a6   : > { %1264 = vmatmul.msk.f32.gmra.mxu1 %vm337_vm5, %v1536_v59  ;;  %1272 = vmatmul.msk.f32.vlgmr.msrb.gmra.mxu3 %vm337_vm5, %v1529_v58 }
 0x1a8   : > { %v331_v47 = vpop.f32.mrf.mxu0 }
 0x1a9   : > { %v332_v48 = vadd.f32 %v331_v47, %v1521_v55 }
 0x1ab   : > { %1280 = vmatpush.xpose.msk.msra.mxu1 %vm337_vm5, %v332_v48  ;;  %702 = vmatpush.msra.mxu3 %v332_v48 }
 0x1ae   : > { %1265 = vmatmul.msk.f32.gmra.mxu1 %vm337_vm5, %v1543_v60  ;;  %1273 = vmatmul.msk.f32.gmra.mxu3 %vm337_vm5, %v1536_v59 }
 0x1b0   : > { %v334_v49 = vpop.f32.mrf.mxu0 }
 0x1b1   : > { %v1581_v50 = vadd.f32 %v334_v49, %v1521_v55 }
 0x1b3   : > { %1289 = vmatpush.xpose.msk.msra.mxu0 %vm337_vm5, %v1581_v50 }
 0x1b6   : > { %1274 = vmatmul.msk.f32.gmra.mxu3 %vm337_vm5, %v1543_v60 }
 0x1be   : > { %1275 = vmatmul.msk.f32.gmra.mxu3 %vm337_vm5, %v1570_v42 }
 0x21b   : > { %v370_v38 = vpop.f32.mrf.mxu1 }
 0x21c   : > { %v383_v40 = vsel %vm382_vm15, %v370_v38, -inf }
 0x21d   : > { %384 = vmax.xlane.f32.xlu1 %v383_v40 }
 0x221   : > { %v379_v5 = vpop.f32.mrf.mxu3 }
 0x222   : > { %v392_v6 = vsel %vm382_vm15, %v379_v5, -inf }
 0x223   : > { %v373_v41 = vpop.f32.mrf.mxu1 }
 0x224   : > { %v386_v43 = vsel %vm382_vm15, %v373_v41, -inf }
 0x225   : > { %387 = vmax.xlane.f32.xlu2 %v386_v43 }
 0x229   : > { %v495_v7 = vpop.f32.mrf.mxu3 }
 0x22a   : > { %v507_v8 = vsel %vm382_vm15, %v495_v7, -inf }
 0x22b   : > { %v376_v44 = vpop.f32.mrf.mxu1 }
 0x22c   : > { %v389_v45 = vsel %vm382_vm15, %v376_v44, -inf }
 0x22d   : > { %390 = vmax.xlane.f32.xlu0 %v389_v45 }
 0x231   : > { %v1594_v9 = vpop.f32.mrf.mxu3 }
 0x232   : > { %v510_v11 = vsel %vm382_vm15, %v1594_v9, -inf }
 0x239   : > { %v501_v13 = vpop.f32.mrf.mxu3 }
 0x23a   : > { %v513_v14 = vsel %vm382_vm15, %v501_v13, -inf }
 0x241   : > { %v1600_v18 = vpop.f32.mrf.mxu3 }
 0x242   : > { %v516_v19 = vsel %vm382_vm15, %v1600_v18, -inf }
 0x290   : > { %v385_v51 = vpop.xlane.xlu1 %384 }
 0x291   : > { %v395_v52 = vsub.f32 %v370_v38, %v385_v51 }
 0x293   : > { %v399_v53 = vmul.f32 1.442695, %v395_v52 }
 0x295   : > { %1338 = vpow2.f32 %v399_v53 }
 0x298   : > { %v388_v54 = vpop.xlane.xlu2 %387 }
 0x299   : > { %v396_v56 = vsub.f32 %v373_v41, %v388_v54  ;;  %v1640_v41 = vld [vmem:[%s1952_s1 + $0x70] sm:$0xff] }
 0x29b   : > { %v1339_v57 = vpop.eup %1338  ;;  %v401_v61 = vmul.f32 1.442695, %v396_v56 }
 0x29c   : > { %v407_v55 = vsel %vm382_vm15, %v1339_v57, 0.0 }
 0x29d   : > { %1340 = vpow2.f32 %v401_v61  ;;  %408 = vadd.xlane.f32.xlu1 %v407_v55 }
 0x2a0   : > { %v391_v62 = vpop.xlane.xlu0 %390 }
 0x2a1   : > { %v397_v63 = vsub.f32 %v376_v44, %v391_v62 }
 0x2a3   : > { %v1341_v0 = vpop.eup %1340  ;;  %v403_v1 = vmul.f32 1.442695, %v397_v63 }
 0x2a4   : > { %v410_v2 = vsel %vm382_vm15, %v1341_v0, 0.0 }
 0x2a5   : > { %1342 = vpow2.f32 %v403_v1  ;;  %411 = vadd.xlane.f32.xlu2 %v410_v2  ;;  %511 = vmax.xlane.f32.xlu1 %v510_v11 }
 0x2ab   : > { %v1343_v3 = vpop.eup %1342 }
 0x2ac   : > { %v413_v4 = vsel %vm382_vm15, %v1343_v3, 0.0 }
 0x2ad   : > { %414 = vadd.xlane.f32.xlu0 %v413_v4  ;;  %393 = vmax.xlane.f32.xlu2 %v392_v6 }
 0x2b5   : > { %508 = vmax.xlane.f32.xlu0 %v507_v8  ;;  %514 = vmax.xlane.f32.xlu2 %v513_v14 }
 0x2bd   : > { %517 = vmax.xlane.f32.xlu0 %v516_v19 }
 0x310   : > { %v409_v12 = vpop.xlane.xlu1 %408 }
 0x311   : > { %1344 = vrcp.f32 %v409_v12 }
 0x317   : > { %v1345_v15 = vpop.eup %1344 }
 0x318   : > { %v412_v16 = vpop.xlane.xlu2 %411  ;;  %v423_v17 = vmul.f32 %v1345_v15, %v1339_v57  ;;  %v512_v61 = vpop.xlane.xlu1 %511 }
 0x319   : > { %1346 = vrcp.f32 %v412_v16  ;;  %v520_v62 = vsub.f32 %v1594_v9, %v512_v61 }
 0x31a   : > { %1267 = vmatmul.msk.f32.vlgmr.msrb.gmra.mxu0 %vm382_vm15, %v423_v17 }
 0x31b   : > { %v525_v2 = vmul.f32 1.442695, %v520_v62 }
 0x31f   : > { %v1347_v20 = vpop.eup %1346 }
 0x320   : > { %v415_v21 = vpop.xlane.xlu0 %414  ;;  %v424_v22 = vmul.f32 %v1347_v20, %v1341_v0  ;;  %v394_v25 = vpop.xlane.xlu2 %393 }
 0x321   : > { %1348 = vrcp.f32 %v415_v21  ;;  %v398_v26 = vsub.f32 %v379_v5, %v394_v25 }
 0x322   : > { %1268 = vmatmul.msk.f32.vlgmr.msrb.gmra.mxu1 %vm382_vm15, %v424_v22  ;;  %1290 = vmatmul.msk.f32.vlgmr.msra.gmra.mxu0 %vm337_vm5, %v1529_v58 }
 0x323   : > { %v405_v28 = vmul.f32 1.442695, %v398_v26 }
 0x325   : > { %1350 = vpow2.f32 %v405_v28 }
 0x327   : > { %v1349_v23 = vpop.eup %1348 }
 0x328   : > { %v425_v24 = vmul.f32 %v1349_v23, %v1343_v3  ;;  %v515_v38 = vpop.xlane.xlu2 %514 }
 0x329   : > { %v521_v43 = vsub.f32 %v501_v13, %v515_v38 }
 0x32a   : > { %1269 = vmatmul.msk.f32.gmra.mxu1 %vm382_vm15, %v425_v24  ;;  %1291 = vmatmul.msk.f32.gmra.mxu0 %vm337_vm5, %v1536_v59 }
 0x32b   : > { %v1635_v40 = vpop.eup %1350 }
 0x32c   : > { %v416_v46 = vsel %vm382_vm15, %v1635_v40, 0.0 }
 0x332   : > { %1281 = vmatmul.msk.f32.vlgmr.msra.gmra.mxu1 %vm337_vm5, %v1529_v58  ;;  %1292 = vmatmul.msk.f32.gmra.mxu0 %vm337_vm5, %v1543_v60  ;;  %v509_v58 = vpop.xlane.xlu0 %508 }
 0x33a   : > { %1282 = vmatmul.msk.f32.gmra.mxu1 %vm337_vm5, %v1536_v59  ;;  %1293 = vmatmul.msk.f32.gmra.mxu0 %vm337_vm5, %v1570_v42  ;;  %v1630_v59 = vld [vmem:[%s1952_s1 + $0x68] sm:$0xff]  ;;  %v518_v3 = vpop.xlane.xlu0 %517 }
 0x33b   : > { %v522_v5 = vsub.f32 %v1600_v18, %v518_v3 }
 0x33d   : > { %v529_v8 = vmul.f32 1.442695, %v522_v5 }
 0x342   : > { %1283 = vmatmul.msk.f32.gmra.mxu1 %vm337_vm5, %v1543_v60  ;;  %v519_v60 = vsub.f32 %v495_v7, %v509_v58 }
 0x344   : > { %v523_v36 = vmul.f32 1.442695, %v519_v60 }
 0x346   : > { %1352 = vpow2.f32 %v523_v36 }
 0x34a   : > { %1284 = vmatmul.msk.f32.gmra.mxu1 %vm337_vm5, %v1570_v42  ;;  %v527_v42 = vmul.f32 1.442695, %v521_v43 }
 0x34c   : > { %v1647_v47 = vpop.eup %1352  ;;  %1354 = vpow2.f32 %v527_v42 }
 0x34d   : > { %v531_v51 = vsel %vm382_vm15, %v1647_v47, 0.0  ;;  %1356 = vpow2.f32 %v525_v2 }
 0x34e   : > { %1358 = vpow2.f32 %v529_v8 }
 0x352   : > { %v1652_v52 = vpop.eup %1354 }
 0x353   : > { %v537_v57 = vsel %vm382_vm15, %v1652_v52, 0.0  ;;  %v1671_v11 = vpop.eup %1356 }
 0x354   : > { %v534_v13 = vsel %vm382_vm15, %v1671_v11, 0.0  ;;  %v1677_v14 = vpop.eup %1358 }
 0x355   : > { %v540_v15 = vsel %vm382_vm15, %v1677_v14, 0.0 }
 0x397   : > { %v456_v27 = vpop.f32.mrf.mxu0 }
 0x398   : > { %v468_v32 = vmul.f32 %v456_v27, %v1625_v29 }
 0x39f   : > { %v459_v30 = vpop.f32.mrf.mxu1  ;;  %v743_v31 = vpop.f32.mrf.mxu0 }
 0x3a0   : > { %v469_v33 = vmul.f32 %v459_v30, %v1630_v59  ;;  %v755_v34 = vsel %vm382_vm15, %v743_v31, -inf }
 0x3a1   : > { %756 = vmax.xlane.f32.xlu0 %v755_v34 }
 0x3a2   : > { %v472_v35 = vadd.f32 %v469_v33, %v468_v32 }
 0x3a7   : > { %v462_v44 = vpop.f32.mrf.mxu1  ;;  %v1654_v54 = vpop.f32.mrf.mxu0 }
 0x3a8   : > { %v470_v45 = vmul.f32 %v462_v44, %v1640_v41  ;;  %v758_v55 = vsel %vm382_vm15, %v1654_v54, -inf }
 0x3a9   : > { %417 = vadd.xlane.f32.xlu0 %v416_v46 }
 0x3aa   : > { %v1645_v39 = vadd.f32 %v472_v35, %v470_v45 }
 0x3af   : > { %v619_v48 = vpop.f32.mrf.mxu1  ;;  %v1663_v1 = vpop.f32.mrf.mxu0 }
 0x3b0   : > { %v631_v49 = vsel %vm382_vm15, %v619_v48, -inf  ;;  %v761_v4 = vsel %vm382_vm15, %v1663_v1, -inf }
 0x3b1   : > { %632 = vmax.xlane.f32.xlu1 %v631_v49  ;;  %532 = vadd.xlane.f32.xlu0 %v531_v51 }
 0x3b7   : > { %v622_v53 = vpop.f32.mrf.mxu1  ;;  %v1669_v9 = vpop.f32.mrf.mxu0 }
 0x3b8   : > { %v634_v56 = vsel %vm382_vm15, %v622_v53, -inf  ;;  %v764_v12 = vsel %vm382_vm15, %v1669_v9, -inf }
 0x3b9   : > { %635 = vmax.xlane.f32.xlu2 %v634_v56  ;;  %538 = vadd.xlane.f32.xlu0 %v537_v57 }
 0x3bf   : > { %v625_v63 = vpop.f32.mrf.mxu1 }
 0x3c0   : > { %v637_v0 = vsel %vm382_vm15, %v625_v63, -inf }
 0x3c1   : > { %759 = vmax.xlane.f32.xlu2 %v758_v55  ;;  %638 = vmax.xlane.f32.xlu1 %v637_v0 }
 0x3c7   : > { %v628_v6 = vpop.f32.mrf.mxu1 }
 0x3c8   : > { %v640_v7 = vsel %vm382_vm15, %v628_v6, -inf }
 0x3c9   : > { %762 = vmax.xlane.f32.xlu2 %v761_v4  ;;  %641 = vmax.xlane.f32.xlu1 %v640_v7 }
 0x3d1   : > { %535 = vadd.xlane.f32.xlu2 %v534_v13  ;;  %765 = vmax.xlane.f32.xlu1 %v764_v12 }
 0x3d9   : > { %541 = vadd.xlane.f32.xlu1 %v540_v15 }
 0x414   : > { %v757_v16 = vpop.xlane.xlu0 %756 }
 0x415   : > { %v767_v17 = vsub.f32 %v743_v31, %v757_v16  ;;  %v157_v16 = vld [vmem:[%s1952_s1 + $0x50] sm:$0xff] }
 0x417   : > { %v771_v18 = vmul.f32 1.442695, %v767_v17 }
 0x419   : > { %1360 = vpow2.f32 %v771_v18 }
 0x41c   : > { %v418_v19 = vpop.xlane.xlu0 %417 }
 0x41d   : > { %1362 = vrcp.f32 %v418_v19 }
 0x41f   : > { %v1681_v20 = vpop.eup %1360 }
 0x420   : > { %v779_v21 = vsel %vm382_vm15, %v1681_v20, 0.0 }
 0x421   : > { %780 = vadd.xlane.f32.xlu1 %v779_v21 }
 0x423   : > { %v1363_v22 = vpop.eup %1362 }
 0x424   : > { %v633_v23 = vpop.xlane.xlu1 %632  ;;  %v533_v24 = vpop.xlane.xlu0 %532  ;;  %v426_v25 = vmul.f32 %v1363_v22, %v1635_v40  ;;  %v1744_v22 = vld [vmem:[%s1952_s1 + $0x78] sm:$0xff] }
 0x425   : > { %v643_v26 = vsub.f32 %v619_v48, %v633_v23  ;;  %1364 = vrcp.f32 %v533_v24 }
 0x426   : > { %1270 = vmatmul.msk.f32.vlgmr.msra.gmra.mxu2 %vm382_vm15, %v426_v25 }
 0x427   : > { %v647_v27 = vmul.f32 1.442695, %v643_v26  ;;  %826 = vmatpush.msra.mxu2 %v1581_v50 }
 0x429   : > { %1366 = vpow2.f32 %v647_v27 }
 0x42b   : > { %v1365_v28 = vpop.eup %1364 }
 0x42c   : > { %v636_v58 = vpop.xlane.xlu2 %635  ;;  %v547_v60 = vmul.f32 %v1365_v28, %v1647_v47 }
 0x42d   : > { %v644_v30 = vsub.f32 %v622_v53, %v636_v58 }
 0x42e   : > { %1276 = vmatmul.msk.f32.vlgmr.msrb.gmra.mxu2 %vm382_vm15, %v547_v60 }
 0x42f   : > { %v1690_v31 = vpop.eup %1366  ;;  %v649_v32 = vmul.f32 1.442695, %v644_v30 }
 0x430   : > { %v655_v33 = vsel %vm382_vm15, %v1690_v31, 0.0 }
 0x431   : > { %1368 = vpow2.f32 %v649_v32  ;;  %656 = vadd.xlane.f32.xlu2 %v655_v33 }
 0x434   : > { %v760_v34 = vpop.xlane.xlu2 %759  ;;  %v639_v35 = vpop.xlane.xlu1 %638 }
 0x435   : > { %v768_v50 = vsub.f32 %v1654_v54, %v760_v34  ;;  %v645_v36 = vsub.f32 %v625_v63, %v639_v35 }
 0x437   : > { %v1695_v38 = vpop.eup %1368  ;;  %v773_v40 = vmul.f32 1.442695, %v768_v50  ;;  %v651_v43 = vmul.f32 1.442695, %v645_v36 }
 0x438   : > { %v658_v44 = vsel %vm382_vm15, %v1695_v38, 0.0 }
 0x439   : > { %1370 = vpow2.f32 %v773_v40  ;;  %659 = vadd.xlane.f32.xlu0 %v658_v44 }
 0x43a   : > { %1372 = vpow2.f32 %v651_v43 }
 0x43c   : > { %v763_v45 = vpop.xlane.xlu2 %762  ;;  %v642_v46 = vpop.xlane.xlu1 %641 }
 0x43d   : > { %v769_v42 = vsub.f32 %v1663_v1, %v763_v45  ;;  %v646_v47 = vsub.f32 %v628_v6, %v642_v46  ;;  %v539_v1 = vpop.xlane.xlu0 %538 }
 0x43f   : > { %v1700_v48 = vpop.eup %1370  ;;  %v775_v49 = vmul.f32 1.442695, %v769_v42  ;;  %v653_v51 = vmul.f32 1.442695, %v646_v47 }
 0x440   : > { %v1702_v53 = vpop.eup %1372  ;;  %v782_v54 = vsel %vm382_vm15, %v1700_v48, 0.0 }
 0x441   : > { %1374 = vpow2.f32 %v775_v49  ;;  %v661_v56 = vsel %vm382_vm15, %v1702_v53, 0.0  ;;  %783 = vadd.xlane.f32.xlu0 %v782_v54 }
 0x442   : > { %1376 = vpow2.f32 %v653_v51  ;;  %662 = vadd.xlane.f32.xlu2 %v661_v56 }
 0x444   : > { %v536_v57 = vpop.xlane.xlu2 %535  ;;  %v766_v61 = vpop.xlane.xlu1 %765 }
 0x445   : > { %1378 = vrcp.f32 %v536_v57  ;;  %v770_v55 = vsub.f32 %v1669_v9, %v766_v61 }
 0x447   : > { %v1709_v62 = vpop.eup %1374  ;;  %v777_v63 = vmul.f32 1.442695, %v770_v55  ;;  %v847_v55 = vperm.slane %v1497_v37, 5 }
 0x448   : > { %v1711_v0 = vpop.eup %1376  ;;  %v785_v2 = vsel %vm382_vm15, %v1709_v62, 0.0 }
 0x449   : > { %1380 = vpow2.f32 %v777_v63  ;;  %v664_v3 = vsel %vm382_vm15, %v1711_v0, 0.0 }
 0x44a   : > { %786 = vadd.xlane.f32.xlu2 %v785_v2  ;;  %665 = vadd.xlane.f32.xlu1 %v664_v3  ;;  %1382 = vrcp.f32 %v539_v1 }
 0x44b   : > { %v1379_v4 = vpop.eup %1378 }
 0x44c   : > { %v548_v5 = vmul.f32 %v1379_v4, %v1671_v11  ;;  %v542_v7 = vpop.xlane.xlu1 %541  ;;  %v158_v11 = vld [vmem:[%s1952_s1 + $0x58] sm:$0xff] }
 0x44d   : > { %1384 = vrcp.f32 %v542_v7  ;;  %872 = vmatpush.msrb.mxu1 %v158_v11 }
 0x44e   : > { %1277 = vmatmul.msk.f32.gmra.mxu2 %vm382_vm15, %v548_v5 }
 0x44f   : > { %v1719_v6 = vpop.eup %1380  ;;  %873 = vmatpush.msrb.mxu1 %v157_v16 }
 0x450   : > { %v788_v8 = vsel %vm382_vm15, %v1719_v6, 0.0  ;;  %v1383_v9 = vpop.eup %1382 }
 0x451   : > { %789 = vadd.xlane.f32.xlu0 %v788_v8  ;;  %v549_v12 = vmul.f32 %v1383_v9, %v1652_v52  ;;  %v156_v52 = vld [vmem:[%s1952_s1 + $0x48] sm:$0xff] }
 0x452   : > { %874 = vmatpush.msrb.mxu1 %v156_v52 }
 0x453   : > { %v1385_v13 = vpop.eup %1384 }
 0x454   : > { %v550_v15 = vmul.f32 %v1385_v13, %v1677_v14  ;;  %v155_v14 = vld [vmem:[%s1952_s1 + $0x40] sm:$0xff] }
 0x455   : > { %875 = vmatpush.msrb.mxu1 %v155_v14 }
 0x456   : > { %1278 = vmatmul.msk.f32.gmra.mxu2 %vm382_vm15, %v549_v12 }
 0x45e   : > { %1279 = vmatmul.msk.f32.gmra.mxu2 %vm382_vm15, %v550_v15 }
 0x494   : > { %v781_v17 = vpop.xlane.xlu1 %780 }
 0x495   : > { %1386 = vrcp.f32 %v781_v17 }
 0x49b   : > { %v1387_v18 = vpop.eup %1386 }
 0x49c   : > { %v795_v19 = vmul.f32 %v1387_v18, %v1681_v20 }
 0x49e   : > { %1294 = vmatmul.msk.f32.vlgmr.msra.gmra.mxu2 %vm382_vm15, %v795_v19 }
 0x4a4   : > { %v657_v21 = vpop.xlane.xlu2 %656 }
 0x4a5   : > { %1388 = vrcp.f32 %v657_v21 }
 0x4a9   : > { %v465_v23 = vpop.f32.mrf.mxu2 }
 0x4aa   : > { %v471_v24 = vmul.f32 %v465_v23, %v1744_v22 }
 0x4ab   : > { %v1389_v25 = vpop.eup %1388 }
 0x4ac   : > { %v671_v26 = vmul.f32 %v1389_v25, %v1690_v31  ;;  %v474_v27 = vadd.f32 %v1645_v39, %v471_v24  ;;  %v660_v28 = vpop.xlane.xlu0 %659 }
 0x4ad   : > { %1390 = vrcp.f32 %v660_v28 }
 0x4ae   : > { %1285 = vmatmul.msk.f32.vlgmr.msra.gmra.mxu3 %vm382_vm15, %v671_v26  ;;  %1298 = vmatmul.msk.f32.vlgmr.msrb.gmra.mxu1 %vm189_vm0, %v474_v27 }
 0x4b1   : > { %v580_v44 = vpop.f32.mrf.mxu2 }
 0x4b2   : > { %v592_v49 = vmul.f32 %v580_v44, %v1625_v29 }
 0x4b3   : > { %v1391_v20 = vpop.eup %1390 }
 0x4b4   : > { %v784_v58 = vpop.xlane.xlu0 %783  ;;  %v672_v60 = vmul.f32 %v1391_v20, %v1695_v38 }
 0x4b5   : > { %v663_v30 = vpop.xlane.xlu2 %662  ;;  %1392 = vrcp.f32 %v784_v58 }
 0x4b6   : > { %1394 = vrcp.f32 %v663_v30  ;;  %1286 = vmatmul.msk.f32.gmra.mxu3 %vm382_vm15, %v672_v60 }
 0x4bb   : > { %v1393_v32 = vpop.eup %1392 }
 0x4bc   : > { %v1395_v33 = vpop.eup %1394  ;;  %v796_v31 = vmul.f32 %v1393_v32, %v1700_v48 }
 0x4bd   : > { %v787_v39 = vpop.xlane.xlu2 %786  ;;  %v666_v34 = vpop.xlane.xlu1 %665  ;;  %v673_v35 = vmul.f32 %v1395_v33, %v1702_v53 }
 0x4be   : > { %1396 = vrcp.f32 %v787_v39  ;;  %1295 = vmatmul.msk.f32.gmra.mxu2 %vm382_vm15, %v796_v31 }
 0x4bf   : > { %1398 = vrcp.f32 %v666_v34  ;;  %1287 = vmatmul.msk.f32.gmra.mxu3 %vm382_vm15, %v673_v35 }
 0x4c4   : > { %v1397_v50 = vpop.eup %1396  ;;  %v790_v36 = vpop.xlane.xlu0 %789 }
 0x4c5   : > { %v1399_v38 = vpop.eup %1398  ;;  %1400 = vrcp.f32 %v790_v36  ;;  %v797_v40 = vmul.f32 %v1397_v50, %v1709_v62  ;;  %v166_v36 = vld [vmem:[%s1952_s1 + $0x98] sm:$0xff] }
 0x4c6   : > { %v674_v43 = vmul.f32 %v1399_v38, %v1711_v0  ;;  %1012 = vmatpush.msrb.mxu3 %v166_v36  ;;  %v165_v38 = vld [vmem:[%s1952_s1 + $0x90] sm:$0xff] }
 0x4c7   : > { %1296 = vmatmul.msk.f32.gmra.mxu2 %vm382_vm15, %v797_v40  ;;  %v164_v40 = vld [vmem:[%s1952_s1 + $0x88] sm:$0xff] }
 0x4c8   : > { %1288 = vmatmul.msk.f32.gmra.mxu3 %vm382_vm15, %v674_v43  ;;  %v163_v43 = vld [vmem:[%s1952_s1 + $0x80] sm:$0xff] }
 0x4c9   : > { %1013 = vmatpush.msrb.mxu3 %v165_v38 }
 0x4cb   : > { %v1401_v45 = vpop.eup %1400  ;;  %1014 = vmatpush.msrb.mxu3 %v164_v40 }
 0x4cc   : > { %v798_v46 = vmul.f32 %v1401_v45, %v1719_v6 }
 0x4cd   : > { %1015 = vmatpush.msrb.mxu3 %v163_v43 }
 0x4cf   : > { %1297 = vmatmul.msk.f32.gmra.mxu2 %vm382_vm15, %v798_v46 }
 0x4d1   : > { %v583_v42 = vpop.f32.mrf.mxu2 }
 0x4d2   : > { %v593_v48 = vmul.f32 %v583_v42, %v1630_v59 }
 0x4d4   : > { %v596_v53 = vadd.f32 %v593_v48, %v592_v49 }
 0x4d9   : > { %v586_v47 = vpop.f32.mrf.mxu2 }
 0x4da   : > { %v594_v51 = vmul.f32 %v586_v47, %v1640_v41 }
 0x4dc   : > { %v597_v56 = vadd.f32 %v596_v53, %v594_v51 }
 0x4e1   : > { %v589_v54 = vpop.f32.mrf.mxu2 }
 0x4e2   : > { %v595_v57 = vmul.f32 %v589_v54, %v1744_v22  ;;  %v1815_v54 = vperm.slane %v1497_v37, 2 }
 0x4e4   : > { %v598_v61 = vadd.f32 %v597_v56, %v595_v57 }
 0x4e6   : > { %1299 = vmatmul.msk.f32.gmra.mxu1 %vm189_vm0, %v598_v61  ;;  %v1818_v61 = vperm.slane %v1497_v37, 3 }
 0x521   : > { %v828_v2 = vpop.f32.mrf.mxu2 }
 0x522   : > { %v840_v14 = vmul.f32 %v828_v2, %v1625_v29 }
 0x52b   : > { %v877_v62 = vpop.f32.mrf.mxu1 }
 0x52c   : > { %v1769_v63 = vadd.f32 %v877_v62, %v847_v55 }
 0x52e   : > { %v889_v0 = vsel %vm189_vm0, %v1769_v63, 0.0 }
 0x52f   : > { %890 = vadd.xlane.f32.xlu1 %v889_v0 }
 0x531   : > { %v704_v1 = vpop.f32.mrf.mxu3 }
 0x532   : > { %v716_v7 = vmul.f32 %v704_v1, %v1625_v29 }
 0x539   : > { %v707_v3 = vpop.f32.mrf.mxu3 }
 0x53a   : > { %v717_v6 = vmul.f32 %v707_v3, %v1630_v59 }
 0x53c   : > { %v720_v9 = vadd.f32 %v717_v6, %v716_v7 }
 0x541   : > { %v831_v4 = vpop.f32.mrf.mxu2 }
 0x542   : > { %v710_v5 = vpop.f32.mrf.mxu3  ;;  %v841_v16 = vmul.f32 %v831_v4, %v1630_v59 }
 0x543   : > { %v718_v8 = vmul.f32 %v710_v5, %v1640_v41 }
 0x544   : > { %v844_v18 = vadd.f32 %v841_v16, %v840_v14 }
 0x545   : > { %v721_v15 = vadd.f32 %v720_v9, %v718_v8 }
 0x54a   : > { %v834_v12 = vpop.f32.mrf.mxu2 }
 0x54b   : > { %v713_v13 = vpop.f32.mrf.mxu3  ;;  %v842_v17 = vmul.f32 %v834_v12, %v1640_v41 }
 0x54c   : > { %v719_v11 = vmul.f32 %v713_v13, %v1744_v22 }
 0x54d   : > { %v845_v21 = vadd.f32 %v844_v18, %v842_v17 }
 0x54e   : > { %v722_v52 = vadd.f32 %v721_v15, %v719_v11 }
 0x550   : > { %1300 = vmatmul.msk.f32.gmra.mxu1 %vm189_vm0, %v722_v52 }
 0x552   : > { %v837_v19 = vpop.f32.mrf.mxu2 }
 0x553   : > { %v843_v23 = vmul.f32 %v837_v19, %v1744_v22 }
 0x555   : > { %v846_v24 = vadd.f32 %v845_v21, %v843_v23 }
 0x558   : > { %1301 = vmatmul.msk.f32.gmra.mxu1 %vm189_vm0, %v846_v24  ;;  %v174_v24 = vld [vmem:[%s1952_s1 + $0xd8] sm:$0xff] }
 0x559   : > { %1086 = vmatpush.msrb.mxu0 %v174_v24 }
 0x563   : > { %v880_v25 = vpop.f32.mrf.mxu1 }
 0x564   : > { %v1783_v26 = vadd.f32 %v880_v25, %v847_v55  ;;  %v173_v25 = vld [vmem:[%s1952_s1 + $0xd0] sm:$0xff] }
 0x565   : > { %1087 = vmatpush.msrb.mxu0 %v173_v25  ;;  %v179_v25 = vld [vmem:[%s1952_s1 + $0x100] sm:$0xff] }
 0x566   : > { %v892_v59 = vsel %vm189_vm0, %v1783_v26, 0.0 }
 0x567   : > { %893 = vadd.xlane.f32.xlu2 %v892_v59  ;;  %v172_v59 = vld [vmem:[%s1952_s1 + $0xc8] sm:$0xff] }
 0x568   : > { %1088 = vmatpush.msrb.mxu0 %v172_v59  ;;  %v178_v59 = vld [vmem:[%s1952_s1 + $0xf8] sm:$0xff] }
 0x5a2   : > { %v891_v29 = vpop.xlane.xlu1 %890 }
 0x5a3   : > { %v901_v41 = vmul.f32 %v891_v29, %v1469_v10  ;;  %v171_v29 = vld [vmem:[%s1952_s1 + $0xc0] sm:$0xff] }
 0x5a4   : > { %1089 = vmatpush.msrb.mxu0 %v171_v29  ;;  %v177_v29 = vld [vmem:[%s1952_s1 + $0xf0] sm:$0xff] }
 0x5a5   : > { %v905_v27 = vsub.f32 %v1769_v63, %v901_v41  ;;  %v170_v41 = vld [vmem:[%s1952_s1 + $0xb8] sm:$0xff] }
 0x5a6   : > { %1090 = vmatpush.msrb.mxu0 %v170_v41  ;;  %v176_v41 = vld [vmem:[%s1952_s1 + $0xe8] sm:$0xff] }
 0x5a7   : > { %v909_v28 = vmul.f32 %v905_v27, %v905_v27 }
 0x5a9   : > { %v913_v20 = vsel %vm189_vm0, %v909_v28, 0.0  ;;  %v168_v28 = vld [vmem:[%s1952_s1 + $0xa8] sm:$0xff] }
 0x5aa   : > { %914 = vadd.xlane.f32.xlu2 %v913_v20  ;;  %v167_v20 = vld [vmem:[%s1952_s1 + $0xa0] sm:$0xff] }
 0x5cd   : > { %v883_v22 = vpop.f32.mrf.mxu1 }
 0x5ce   : > { %v1790_v58 = vadd.f32 %v883_v22, %v847_v55  ;;  %v1868_v22 = vld [vmem:[%s1952_s1 + $0x120] sm:$0xff] }
 0x5d0   : > { %v895_v60 = vsel %vm189_vm0, %v1790_v58, 0.0 }
 0x5d1   : > { %896 = vadd.xlane.f32.xlu0 %v895_v60  ;;  %v1871_v60 = vperm.slane %v1868_v22, 7 }
 0x5d5   : > { %v886_v30 = vpop.f32.mrf.mxu1 }
 0x5d6   : > { %v1794_v32 = vadd.f32 %v886_v30, %v847_v55 }
 0x5d8   : > { %v898_v33 = vsel %vm189_vm0, %v1794_v32, 0.0 }
 0x5d9   : > { %899 = vadd.xlane.f32.xlu1 %v898_v33 }
 0x5da   : > { %v894_v31 = vpop.xlane.xlu2 %893 }
 0x5db   : > { %v902_v39 = vmul.f32 %v894_v31, %v1469_v10 }
 0x5dd   : > { %v906_v34 = vsub.f32 %v1783_v26, %v902_v39 }
 0x5df   : > { %v910_v35 = vmul.f32 %v906_v34, %v906_v34 }
 0x5e1   : > { %v916_v50 = vsel %vm189_vm0, %v910_v35, 0.0 }
 0x5e2   : > { %917 = vadd.xlane.f32.xlu0 %v916_v50 }
 0x61d   : > { %v915_v44 = vpop.xlane.xlu2 %914 }
 0x61e   : > { %v925_v45 = vmul.f32 %v915_v44, %v1469_v10 }
 0x620   : > { %v929_v46 = vadd.f32 1e-05, %v925_v45 }
 0x622   : > { %1402 = vrsqrt.f32 %v929_v46  ;;  %vm939_vm2 = vweird.f32 %v929_v46 }
 0x628   : > { %v1403_v42 = vpop.eup %1402 }
 0x629   : > { %v934_v47 = vmul.f32 %v1403_v42, %v929_v46  ;;  %vm940_vm1 = vweird.f32 %v1403_v42 }
 0x62a   : > { %vm941_vm3 = vmor %vm939_vm2, %vm940_vm1 }
 0x62b   : > { %v935_v48 = vmul.f32 %v1403_v42, %v934_v47 }
 0x62d   : > { %v936_v49 = vmul.f32 0.5, %v935_v48 }
 0x62f   : > { %v937_v51 = vsub.f32 1.5, %v936_v49 }
 0x631   : > { %v938_v53 = vmul.f32 %v1403_v42, %v937_v51 }
 0x633   : > { %v942_v56 = vsel %vm941_vm3, %v1403_v42, %v938_v53 }
 0x634   : > { %v973_v57 = vmul.f32 %v942_v56, %v905_v27  ;;  %v169_v27 = vld [vmem:[%s1952_s1 + $0xb0] sm:$0xff] }
 0x635   : > { %1091 = vmatpush.msrb.mxu0 %v169_v27  ;;  %v184_v27 = vld [vmem:[%s1952_s1 + $0x128] sm:$0xff] }
 0x636   : > { %v978_v55 = vmul.f32 %v1815_v54, %v973_v57 }
 0x637   : > { %1092 = vmatpush.msrb.mxu0 %v168_v28  ;;  %v175_v28 = vld [vmem:[%s1952_s1 + $0xe0] sm:$0xff] }
 0x638   : > { %v983_v62 = vadd.f32 %v1818_v61, %v978_v55 }
 0x639   : > { %1093 = vmatpush.msrb.mxu0 %v167_v20  ;;  %v1914_v20 = vperm.slane %v184_v27, 0 }
 0x63a   : > { %1302 = vmatmul.msk.f32.vlgmr.msrb.gmra.mxu3 %vm189_vm0, %v983_v62 }
 0x644   : > { %v897_v0 = vpop.xlane.xlu0 %896 }
 0x645   : > { %v903_v1 = vmul.f32 %v897_v0, %v1469_v10 }
 0x647   : > { %v1825_v2 = vsub.f32 %v1790_v58, %v903_v1 }
 0x649   : > { %v911_v3 = vmul.f32 %v1825_v2, %v1825_v2 }
 0x64b   : > { %v919_v4 = vsel %vm189_vm0, %v911_v3, 0.0 }
 0x64c   : > { %v900_v5 = vpop.xlane.xlu1 %899  ;;  %920 = vadd.xlane.f32.xlu1 %v919_v4 }
 0x64d   : > { %v904_v37 = vmul.f32 %v900_v5, %v1469_v10 }
 0x64f   : > { %v1832_v6 = vsub.f32 %v1794_v32, %v904_v37 }
 0x651   : > { %v912_v7 = vmul.f32 %v1832_v6, %v1832_v6 }
 0x653   : > { %v922_v8 = vsel %vm189_vm0, %v912_v7, 0.0 }
 0x654   : > { %923 = vadd.xlane.f32.xlu2 %v922_v8 }
 0x655   : > { %v918_v9 = vpop.xlane.xlu0 %917 }
 0x656   : > { %v926_v12 = vmul.f32 %v918_v9, %v1469_v10 }
 0x658   : > { %v930_v13 = vadd.f32 1e-05, %v926_v12 }
 0x65a   : > { %1404 = vrsqrt.f32 %v930_v13  ;;  %vm949_vm6 = vweird.f32 %v930_v13 }
 0x660   : > { %v1405_v15 = vpop.eup %1404 }
 0x661   : > { %v944_v11 = vmul.f32 %v1405_v15, %v930_v13  ;;  %vm950_vm4 = vweird.f32 %v1405_v15 }
 0x662   : > { %vm951_vm7 = vmor %vm949_vm6, %vm950_vm4 }
 0x663   : > { %v945_v16 = vmul.f32 %v1405_v15, %v944_v11 }
 0x665   : > { %v946_v52 = vmul.f32 0.5, %v945_v16 }
 0x667   : > { %v947_v14 = vsub.f32 1.5, %v946_v52 }
 0x669   : > { %v948_v17 = vmul.f32 %v1405_v15, %v947_v14 }
 0x66b   : > { %v952_v18 = vsel %vm951_vm7, %v1405_v15, %v948_v17 }
 0x66c   : > { %v974_v19 = vmul.f32 %v952_v18, %v906_v34 }
 0x66e   : > { %v979_v21 = vmul.f32 %v1815_v54, %v974_v19 }
 0x670   : > { %v984_v23 = vadd.f32 %v1818_v61, %v979_v21 }
 0x672   : > { %1303 = vmatmul.msk.f32.gmra.mxu3 %vm189_vm0, %v984_v23 }
 0x6bd   : > { %v1017_v30 = vpop.f32.mrf.mxu3 }
 0x6be   : > { %v1018_v33 = vadd.f32 %v1017_v30, %v1871_v60 }
 0x6bf   : > { %v921_v31 = vpop.xlane.xlu1 %920 }
 0x6c0   : > { %v1029_v39 = vmul.f32 %v1018_v33, %v1018_v33  ;;  %v927_v34 = vmul.f32 %v921_v31, %v1469_v10 }
 0x6c2   : > { %v1033_v35 = vmul.f32 %v1029_v39, %v1018_v33  ;;  %v931_v50 = vadd.f32 1e-05, %v927_v34 }
 0x6c4   : > { %v1037_v36 = vmul.f32 0.044715, %v1033_v35  ;;  %1406 = vrsqrt.f32 %v931_v50  ;;  %vm959_vm9 = vweird.f32 %v931_v50 }
 0x6c6   : > { %v1041_v38 = vadd.f32 %v1037_v36, %v1018_v33 }
 0x6c7   : > { %v924_v40 = vpop.xlane.xlu2 %923 }
 0x6c8   : > { %v1045_v43 = vmul.f32 0.7978846, %v1041_v38  ;;  %v928_v44 = vmul.f32 %v924_v40, %v1469_v10 }
 0x6ca   : > { %v1407_v45 = vpop.eup %1406  ;;  %1408 = vtanh.f32 %v1045_v43  ;;  %v932_v46 = vadd.f32 1e-05, %v928_v44 }
 0x6cb   : > { %v954_v42 = vmul.f32 %v1407_v45, %v931_v50  ;;  %vm960_vm8 = vweird.f32 %v1407_v45 }
 0x6cc   : > { %1410 = vrsqrt.f32 %v932_v46  ;;  %vm961_vm10 = vmor %vm959_vm9, %vm960_vm8  ;;  %vm969_vm12 = vweird.f32 %v932_v46 }
 0x6cd   : > { %v955_v47 = vmul.f32 %v1407_v45, %v954_v42 }
 0x6cf   : > { %v956_v48 = vmul.f32 0.5, %v955_v47 }
 0x6d0   : > { %v1409_v49 = vpop.eup %1408 }
 0x6d1   : > { %v1053_v51 = vadd.f32 1.0, %v1409_v49  ;;  %v957_v53 = vsub.f32 1.5, %v956_v48 }
 0x6d2   : > { %v1411_v56 = vpop.eup %1410 }
 0x6d3   : > { %v1057_v57 = vmul.f32 0.5, %v1053_v51  ;;  %v958_v55 = vmul.f32 %v1407_v45, %v957_v53  ;;  %v964_v62 = vmul.f32 %v1411_v56, %v932_v46  ;;  %vm970_vm11 = vweird.f32 %v1411_v56 }
 0x6d4   : > { %vm971_vm13 = vmor %vm969_vm12, %vm970_vm11 }
 0x6d5   : > { %v1061_v0 = vmul.f32 %v1057_v57, %v1018_v33  ;;  %v962_v1 = vsel %vm961_vm10, %v1407_v45, %v958_v55  ;;  %v965_v10 = vmul.f32 %v1411_v56, %v964_v62 }
 0x6d6   : > { %v975_v3 = vmul.f32 %v962_v1, %v1825_v2 }
 0x6d7   : > { %v966_v4 = vmul.f32 0.5, %v965_v10  ;;  %1306 = vmatmul.msk.f32.vlgmr.msrb.gmra.mxu0 %vm337_vm5, %v1061_v0 }
 0x6d8   : > { %v980_v5 = vmul.f32 %v1815_v54, %v975_v3 }
 0x6d9   : > { %v967_v37 = vsub.f32 1.5, %v966_v4 }
 0x6da   : > { %v985_v7 = vadd.f32 %v1818_v61, %v980_v5 }
 0x6db   : > { %v968_v8 = vmul.f32 %v1411_v56, %v967_v37 }
 0x6dc   : > { %1304 = vmatmul.msk.f32.gmra.mxu3 %vm189_vm0, %v985_v7 }
 0x6dd   : > { %v972_v9 = vsel %vm971_vm13, %v1411_v56, %v968_v8 }
 0x6de   : > { %v976_v12 = vmul.f32 %v972_v9, %v1832_v6  ;;  %v180_v6 = vld [vmem:[%s1952_s1 + $0x108] sm:$0xff] }
 0x6e0   : > { %v981_v13 = vmul.f32 %v1815_v54, %v976_v12  ;;  %v182_v54 = vld [vmem:[%s1952_s1 + $0x118] sm:$0xff] }
 0x6e1   : > { %1164 = vmatpush.msrb.mxu2 %v182_v54 }
 0x6e2   : > { %v986_v2 = vadd.f32 %v1818_v61, %v981_v13  ;;  %v181_v61 = vld [vmem:[%s1952_s1 + $0x110] sm:$0xff] }
 0x6e3   : > { %1165 = vmatpush.msrb.mxu2 %v181_v61 }
 0x6e4   : > { %1305 = vmatmul.msk.f32.gmra.mxu3 %vm189_vm0, %v986_v2 }
 0x6e5   : > { %1166 = vmatpush.msrb.mxu2 %v180_v6 }
 0x6e7   : > { %1167 = vmatpush.msrb.mxu2 %v179_v25 }
 0x6e9   : > { %1168 = vmatpush.msrb.mxu2 %v178_v59 }
 0x6eb   : > { %1169 = vmatpush.msrb.mxu2 %v177_v29 }
 0x6ed   : > { %1170 = vmatpush.msrb.mxu2 %v176_v41 }
 0x6ef   : > { %1171 = vmatpush.msrb.mxu2 %v175_v28 }
 0x6f5   : > { %v1020_v15 = vpop.f32.mrf.mxu3 }
 0x6f6   : > { %v1021_v11 = vadd.f32 %v1020_v15, %v1871_v60 }
 0x6f8   : > { %v1030_v16 = vmul.f32 %v1021_v11, %v1021_v11 }
 0x6fa   : > { %v1034_v52 = vmul.f32 %v1030_v16, %v1021_v11 }
 0x6fc   : > { %v1038_v14 = vmul.f32 0.044715, %v1034_v52 }
 0x6fe   : > { %v1042_v17 = vadd.f32 %v1038_v14, %v1021_v11 }
 0x700   : > { %v1046_v18 = vmul.f32 0.7978846, %v1042_v17 }
 0x702   : > { %1412 = vtanh.f32 %v1046_v18  ;;  %v1143_v18 = vperm.slane %v1868_v22, 6 }
 0x708   : > { %v1413_v19 = vpop.eup %1412 }
 0x709   : > { %v1054_v21 = vadd.f32 1.0, %v1413_v19 }
 0x70b   : > { %v1058_v23 = vmul.f32 0.5, %v1054_v21 }
 0x70d   : > { %v1062_v24 = vmul.f32 %v1058_v23, %v1021_v11 }
 0x70f   : > { %1307 = vmatmul.msk.f32.gmra.mxu0 %vm337_vm5, %v1062_v24 }
 0x754   : > { %v1095_v30 = vpop.f32.mrf.mxu0 }
 0x755   : > { %v1096_v33 = vadd.f32 %v1095_v30, %v1914_v20 }
 0x757   : > { %v1107_v31 = vmul.f32 %v1096_v33, %v1096_v33 }
 0x759   : > { %v1111_v39 = vmul.f32 %v1107_v31, %v1096_v33 }
 0x75b   : > { %v1115_v34 = vmul.f32 0.044715, %v1111_v39 }
 0x75d   : > { %v1119_v35 = vadd.f32 %v1115_v34, %v1096_v33 }
 0x75f   : > { %v1123_v50 = vmul.f32 0.7978846, %v1119_v35  ;;  %v1023_v36 = vpop.f32.mrf.mxu3 }
 0x760   : > { %v1024_v38 = vadd.f32 %v1023_v36, %v1871_v60 }
 0x761   : > { %1414 = vtanh.f32 %v1123_v50 }
 0x762   : > { %v1031_v40 = vmul.f32 %v1024_v38, %v1024_v38 }
 0x764   : > { %v1035_v43 = vmul.f32 %v1031_v40, %v1024_v38 }
 0x766   : > { %v1039_v44 = vmul.f32 0.044715, %v1035_v43 }
 0x767   : > { %v1415_v45 = vpop.eup %1414  ;;  %v1026_v46 = vpop.f32.mrf.mxu3 }
 0x768   : > { %v1131_v42 = vadd.f32 1.0, %v1415_v45  ;;  %v1043_v47 = vadd.f32 %v1039_v44, %v1024_v38  ;;  %v1027_v48 = vadd.f32 %v1026_v46, %v1871_v60 }
 0x76a   : > { %v1135_v49 = vmul.f32 0.5, %v1131_v42  ;;  %v1032_v51 = vmul.f32 %v1027_v48, %v1027_v48  ;;  %v1047_v53 = vmul.f32 0.7978846, %v1043_v47 }
 0x76c   : > { %v1139_v56 = vmul.f32 %v1135_v49, %v1096_v33  ;;  %v1036_v57 = vmul.f32 %v1032_v51, %v1027_v48  ;;  %1416 = vtanh.f32 %v1047_v53 }
 0x76e   : > { %v1040_v55 = vmul.f32 0.044715, %v1036_v57  ;;  %1310 = vmatmul.msk.f32.vlgmr.msrb.gmra.mxu2 %vm337_vm5, %v1139_v56 }
 0x770   : > { %v1044_v62 = vadd.f32 %v1040_v55, %v1027_v48 }
 0x772   : > { %v1417_v0 = vpop.eup %1416  ;;  %v1048_v1 = vmul.f32 0.7978846, %v1044_v62 }
 0x773   : > { %v1055_v10 = vadd.f32 1.0, %v1417_v0 }
 0x774   : > { %1418 = vtanh.f32 %v1048_v1 }
 0x775   : > { %v1059_v3 = vmul.f32 0.5, %v1055_v10 }
 0x777   : > { %v1063_v4 = vmul.f32 %v1059_v3, %v1024_v38 }
 0x779   : > { %1308 = vmatmul.msk.f32.gmra.mxu0 %vm337_vm5, %v1063_v4 }
 0x77a   : > { %v1419_v5 = vpop.eup %1418 }
 0x77b   : > { %v1056_v60 = vadd.f32 1.0, %v1419_v5 }
 0x77d   : > { %v1060_v37 = vmul.f32 0.5, %v1056_v60 }
 0x77f   : > { %v1064_v7 = vmul.f32 %v1060_v37, %v1027_v48 }
 0x781   : > { %1309 = vmatmul.msk.f32.gmra.mxu0 %vm337_vm5, %v1064_v7 }
 0x78c   : > { %v1098_v8 = vpop.f32.mrf.mxu0 }
 0x78d   : > { %v1099_v9 = vadd.f32 %v1098_v8, %v1914_v20 }
 0x78f   : > { %v1108_v12 = vmul.f32 %v1099_v9, %v1099_v9 }
 0x791   : > { %v1112_v13 = vmul.f32 %v1108_v12, %v1099_v9 }
 0x793   : > { %v1116_v2 = vmul.f32 0.044715, %v1112_v13 }
 0x795   : > { %v1120_v15 = vadd.f32 %v1116_v2, %v1099_v9 }
 0x797   : > { %v1124_v11 = vmul.f32 0.7978846, %v1120_v15 }
 0x799   : > { %1420 = vtanh.f32 %v1124_v11 }
 0x79f   : > { %v1421_v16 = vpop.eup %1420 }
 0x7a0   : > { %v1132_v52 = vadd.f32 1.0, %v1421_v16 }
 0x7a2   : > { %v1136_v14 = vmul.f32 0.5, %v1132_v52 }
 0x7a4   : > { %v1140_v17 = vmul.f32 %v1136_v14, %v1099_v9 }
 0x7a6   : > { %1311 = vmatmul.msk.f32.gmra.mxu2 %vm337_vm5, %v1140_v17 }
 0x7f1   : > { %v1173_v19 = vpop.f32.mrf.mxu2 }
 0x7f2   : > { %v1174_v21 = vadd.f32 %v1173_v19, %v1143_v18 }
 0x7f4   : > { %v1185_v23 = vadd.f32 %v1174_v21, %v1769_v63 }
 0x7f6   : > { %1189 = vst.msk [vmem:[%s1930_s21] sm:$0xff] %vm189_vm0, %v1185_v23  ;;  %v1101_v24 = vpop.f32.mrf.mxu0 }
 0x7f7   : > { %v1102_v54 = vadd.f32 %v1101_v24, %v1914_v20 }
 0x7f9   : > { %v1109_v61 = vmul.f32 %v1102_v54, %v1102_v54 }
 0x7fb   : > { %v1113_v6 = vmul.f32 %v1109_v61, %v1102_v54 }
 0x7fd   : > { %v1117_v25 = vmul.f32 0.044715, %v1113_v6 }
 0x7fe   : > { %v1104_v22 = vpop.f32.mrf.mxu0 }
 0x7ff   : > { %v1121_v59 = vadd.f32 %v1117_v25, %v1102_v54  ;;  %v1105_v29 = vadd.f32 %v1104_v22, %v1914_v20 }
 0x801   : > { %v1110_v41 = vmul.f32 %v1105_v29, %v1105_v29  ;;  %v1125_v27 = vmul.f32 0.7978846, %v1121_v59 }
 0x803   : > { %v1114_v28 = vmul.f32 %v1110_v41, %v1105_v29  ;;  %1422 = vtanh.f32 %v1125_v27 }
 0x805   : > { %v1118_v30 = vmul.f32 0.044715, %v1114_v28 }
 0x807   : > { %v1122_v33 = vadd.f32 %v1118_v30, %v1105_v29 }
 0x809   : > { %v1423_v63 = vpop.eup %1422  ;;  %v1126_v31 = vmul.f32 0.7978846, %v1122_v33 }
 0x80a   : > { %v1133_v39 = vadd.f32 1.0, %v1423_v63 }
 0x80b   : > { %1424 = vtanh.f32 %v1126_v31 }
 0x80c   : > { %v1137_v34 = vmul.f32 0.5, %v1133_v39 }
 0x80e   : > { %v1141_v35 = vmul.f32 %v1137_v34, %v1102_v54 }
 0x810   : > { %1312 = vmatmul.msk.f32.gmra.mxu2 %vm337_vm5, %v1141_v35 }
 0x811   : > { %v1425_v50 = vpop.eup %1424 }
 0x812   : > { %v1134_v36 = vadd.f32 1.0, %v1425_v50 }
 0x814   : > { %v1138_v20 = vmul.f32 0.5, %v1134_v36 }
 0x816   : > { %v1142_v38 = vmul.f32 %v1138_v20, %v1105_v29 }
 0x818   : > { %1313 = vmatmul.msk.f32.gmra.mxu2 %vm337_vm5, %v1142_v38 }
 0x829   : > { %v1176_v40 = vpop.f32.mrf.mxu2 }
 0x82a   : > { %v1177_v43 = vadd.f32 %v1176_v40, %v1143_v18 }
 0x82c   : > { %v1186_v44 = vadd.f32 %v1177_v43, %v1783_v26 }
 0x82e   : > { %1190 = vst.msk [vmem:[%s1930_s21 + $0x8] sm:$0xff] %vm189_vm0, %v1186_v44 }
 0x893   : > { %v1179_v45 = vpop.f32.mrf.mxu2 }
 0x894   : > { %v1180_v46 = vadd.f32 %v1179_v45, %v1143_v18 }
 0x896   : > { %v1187_v42 = vadd.f32 %v1180_v46, %v1790_v58 }
 0x898   : > { %1191 = vst.msk [vmem:[%s1930_s21 + $0x10] sm:$0xff] %vm189_vm0, %v1187_v42 }
 0x89b   : > { %v1182_v47 = vpop.f32.mrf.mxu2 }
 0x89c   : > { %v1183_v48 = vadd.f32 %v1182_v47, %v1143_v18 }
 0x89e   : > { %v1188_v49 = vadd.f32 %v1183_v48, %v1794_v32 }
 0x8a0   : > { %1192 = vst.msk [vmem:[%s1930_s21 + $0x18] sm:$0xff] %vm189_vm0, %v1188_v49 }
 0x8a1 PF: > { %s12_s9 = sadd.s32 1, %s1433_s9  }
 0x8a2   : > { %p9_p4 = scmp.ge.s32.totalorder %s12_s9, 4  }
 0x8a4   :  { %11 = sbr.rel (!%p9_p4) target bundleno = 1 (0x1), region = 58 }

</bundles_post_ra>
